<compile_context>
chip_gen: v6e
topology: v6e:2x2x1
jax: 0.10.0
libtpu: 0.0.40
codegen_flags: <defaults>
</compile_context>

<pallas_src>
import functools
import math

import jax
import jax.numpy as jnp
import numpy as np
from jax import lax
from jax.experimental import pallas as pl
from jax.experimental.pallas import tpu as pltpu


def cross_attention_kernel(tgt_ref, qpos_ref, mem_ref, pos_ref,
                           wq_ref, wk_ref, wv_ref, wo_ref,
                           bq_ref, bk_ref, bv_ref, bo_ref,
                           g_ref, bt_ref, o_ref,
                           q_scr, m_scr, l_scr, acc_scr,
                           *, nhead, head_dim, s_total, compute_dtype):
    f32 = jnp.float32
    c = lambda x: x.astype(compute_dtype)           # MXU operand dtype (bf16 fast path)
    L, D = q_scr.shape
    tile_s = mem_ref.shape[1]
    t = pl.program_id(1)
    nt = pl.num_programs(1)
    scale = 1.0 / math.sqrt(head_dim)

    # ---- once per batch element: q-projection + accumulator init ----------
    @pl.when(t == 0)
    def _():
        q_in = tgt_ref[0].astype(f32) + qpos_ref[0].astype(f32)     # (L, D)
        q = jnp.dot(c(q_in), wq_ref[...], preferred_element_type=f32)
        q_scr[...] = c(q + bq_ref[...].astype(f32))
        m_scr[...] = jnp.full(m_scr.shape, -1e30, f32)
        l_scr[...] = jnp.zeros(l_scr.shape, f32)
        acc_scr[...] = jnp.zeros(acc_scr.shape, f32)

    # ---- per kv tile: K/V projection -------------------------------------
    mem = mem_ref[0].astype(f32)                                     # (tile_s, D)
    k_in = mem + pos_ref[0].astype(f32)
    k = c(jnp.dot(c(k_in), wk_ref[...], preferred_element_type=f32)
          + bk_ref[...].astype(f32))                                 # (tile_s, D)
    v = c(jnp.dot(c(mem), wv_ref[...], preferred_element_type=f32)
          + bv_ref[...].astype(f32))                                 # (tile_s, D)
    qc = q_scr[...]                                                  # (L, D) compute dtype

    needs_mask = (s_total % tile_s) != 0                             # static
    if needs_mask:
        col = t * tile_s + lax.broadcasted_iota(jnp.int32, (L, tile_s), 1)
        neg = jnp.where(col < s_total, jnp.float32(0.0), jnp.float32(-1e30))

    # ---- per-head online softmax (static unroll, nhead is small) ----------
    contract_last = (((1,), (1,)), ((), ()))                         # q · kᵀ
    for h in range(nhead):
        lo = h * head_dim
        hi = lo + head_dim
        s = lax.dot_general(qc[:, lo:hi], k[:, lo:hi], contract_last,
                            preferred_element_type=f32) * scale      # (L, tile_s)
        if needs_mask:
            s = s + neg
        m_prev = m_scr[h]                                            # (L, 1)
        m_new = jnp.maximum(m_prev, jnp.max(s, axis=-1, keepdims=True))
        alpha = jnp.exp(m_prev - m_new)                              # EUP
        p = jnp.exp(s - m_new)                                       # (L, tile_s)
        l_scr[h] = alpha * l_scr[h] + jnp.sum(p, axis=-1, keepdims=True)
        acc_scr[h] = alpha * acc_scr[h] + jnp.dot(c(p), v[:, lo:hi],
                                                  preferred_element_type=f32)
        m_scr[h] = m_new

    # ---- finalize: out-projection + residual + LayerNorm ------------------
    @pl.when(t == nt - 1)
    def _():
        wo = wo_ref[...]                                             # (D, D) compute dtype
        attn = jnp.zeros((L, D), f32)
        for h in range(nhead):
            lo = h * head_dim
            ctx = acc_scr[h] * pl.reciprocal(l_scr[h])               # (L, dh) f32
            attn = attn + jnp.dot(c(ctx), wo[lo:lo + head_dim, :],
                                  preferred_element_type=f32)
        z = tgt_ref[0].astype(f32) + attn + bo_ref[...].astype(f32)  # residual (dropout=0)
        mu = jnp.mean(z, axis=-1, keepdims=True)
        zc = z - mu
        var = jnp.mean(zc * zc, axis=-1, keepdims=True)
        zn = zc * lax.rsqrt(var + 1e-5)
        o_ref[0] = (zn * g_ref[...].astype(f32)
                    + bt_ref[...].astype(f32)).astype(o_ref.dtype)


def cross_attention_layer_forward(tgt, memory, in_proj_w, in_proj_b,
                                  out_proj_w, out_proj_b, ln_weight, ln_bias,
                                  *, nhead, pos=None, query_pos=None,
                                  compute_dtype=jnp.bfloat16, kv_tile=512):
    """forward_post of CrossAttentionLayer.

    tgt: (L, B, D), memory: (S, B, D) -> returns (L, B, D).
    in_proj_w: (3D, D) packed [Wq; Wk; Wv], in_proj_b: (3D,),
    out_proj_w: (D, D), out_proj_b: (D,), ln_weight/ln_bias: (D,).
    """
    L, B, D = tgt.shape
    S = memory.shape[0]
    assert D % nhead == 0, "d_model must be divisible by nhead"
    head_dim = D // nhead

    if query_pos is None:
        query_pos = jnp.zeros_like(tgt)
    if pos is None:
        pos = jnp.zeros_like(memory)

    # kv tile: multiple of 8, at most kv_tile; pad S up to a whole tile.
    round_up = lambda x, m: (x + m - 1) // m * m
    tile_s = round_up(min(kv_tile, round_up(S, 8)), 8)
    s_pad = round_up(S, tile_s)
    nt = s_pad // tile_s

    # Batch-major layout: the grid blocks the leading axis only, so trailing
    # block dims either divide (8,128) or equal the full array dims.
    tgt_b = jnp.transpose(tgt, (1, 0, 2))          # (B, L, D)
    qpos_b = jnp.transpose(query_pos, (1, 0, 2))   # (B, L, D)
    mem_b = jnp.transpose(memory, (1, 0, 2))       # (B, S, D)
    pos_b = jnp.transpose(pos, (1, 0, 2))          # (B, S, D)
    if s_pad != S:
        pad = ((0, 0), (0, s_pad - S), (0, 0))
        mem_b = jnp.pad(mem_b, pad)
        pos_b = jnp.pad(pos_b, pad)

    # Pre-transpose projection weights so the kernel computes x @ W (+ b) and
    # pre-cast them to the MXU compute dtype (halves weight DMA on the bf16 path).
    wq = jnp.transpose(in_proj_w[:D]).astype(compute_dtype)          # (D, D)
    wk = jnp.transpose(in_proj_w[D:2 * D]).astype(compute_dtype)
    wv = jnp.transpose(in_proj_w[2 * D:]).astype(compute_dtype)
    wo = jnp.transpose(out_proj_w).astype(compute_dtype)
    bq = in_proj_b[:D].reshape(1, D)
    bk = in_proj_b[D:2 * D].reshape(1, D)
    bv = in_proj_b[2 * D:].reshape(1, D)
    bo = out_proj_b.reshape(1, D)
    g = ln_weight.reshape(1, D)
    bt = ln_bias.reshape(1, D)

    kernel = functools.partial(cross_attention_kernel, nhead=nhead,
                               head_dim=head_dim, s_total=S,
                               compute_dtype=compute_dtype)

    q_block = pl.BlockSpec((1, L, D), lambda b, t: (b, 0, 0))
    kv_block = pl.BlockSpec((1, tile_s, D), lambda b, t: (b, t, 0))

    def const_block(shape):
        return pl.BlockSpec(shape, lambda b, t: (0,) * len(shape))

    out_b = pl.pallas_call(
        kernel,
        out_shape=jax.ShapeDtypeStruct((B, L, D), tgt.dtype),
        grid_spec=pltpu.PrefetchScalarGridSpec(
            num_scalar_prefetch=0,
            grid=(B, nt),
            in_specs=[
                q_block,                 # tgt
                q_block,                 # query_pos
                kv_block,                # memory tile
                kv_block,                # pos tile
                const_block((D, D)),     # Wq
                const_block((D, D)),     # Wk
                const_block((D, D)),     # Wv
                const_block((D, D)),     # Wo
                const_block((1, D)),     # bq
                const_block((1, D)),     # bk
                const_block((1, D)),     # bv
                const_block((1, D)),     # bo
                const_block((1, D)),     # LN weight
                const_block((1, D)),     # LN bias
            ],
            out_specs=q_block,
            scratch_shapes=[
                pltpu.VMEM((L, D), compute_dtype),          # projected q
                pltpu.VMEM((nhead, L, 1), jnp.float32),     # running max
                pltpu.VMEM((nhead, L, 1), jnp.float32),     # running sum
                pltpu.VMEM((nhead, L, head_dim), jnp.float32),  # running ctx
            ]),
        compiler_params=pltpu.CompilerParams(
            dimension_semantics=("parallel", "arbitrary")),
    )(tgt_b, qpos_b, mem_b, pos_b, wq, wk, wv, wo, bq, bk, bv, bo, g, bt)

    return jnp.transpose(out_b, (1, 0, 2))         # back to (L, B, D)


def _xavier_uniform(key, shape):
    fan_out, fan_in = shape                        # torch weight layout (out, in)
    bound = math.sqrt(6.0 / (fan_in + fan_out))
    return jax.random.uniform(key, shape, jnp.float32, -bound, bound)


def reference_forward(tgt, memory, in_proj_w, in_proj_b, out_proj_w,
                      out_proj_b, ln_w, ln_b, nhead, pos, query_pos):
    """Pure numpy float64 ground truth of forward_post."""
    tgt = np.asarray(tgt, np.float64)
    memory = np.asarray(memory, np.float64)
    pos = np.asarray(pos, np.float64)
    query_pos = np.asarray(query_pos, np.float64)
    in_proj_w = np.asarray(in_proj_w, np.float64)
    in_proj_b = np.asarray(in_proj_b, np.float64)
    out_proj_w = np.asarray(out_proj_w, np.float64)
    out_proj_b = np.asarray(out_proj_b, np.float64)
    ln_w = np.asarray(ln_w, np.float64)
    ln_b = np.asarray(ln_b, np.float64)

    L, B, D = tgt.shape
    S = memory.shape[0]
    dh = D // nhead

    q_in = tgt + query_pos
    k_in = memory + pos
    q = q_in @ in_proj_w[:D].T + in_proj_b[:D]
    k = k_in @ in_proj_w[D:2 * D].T + in_proj_b[D:2 * D]
    v = memory @ in_proj_w[2 * D:].T + in_proj_b[2 * D:]

    qh = q.reshape(L, B, nhead, dh).transpose(1, 2, 0, 3)   # (B, H, L, dh)
    kh = k.reshape(S, B, nhead, dh).transpose(1, 2, 0, 3)   # (B, H, S, dh)
    vh = v.reshape(S, B, nhead, dh).transpose(1, 2, 0, 3)

    s = np.einsum('bhld,bhsd->bhls', qh, kh) / math.sqrt(dh)
    s = s - s.max(-1, keepdims=True)
    p = np.exp(s)
    p = p / p.sum(-1, keepdims=True)
    ctx = np.einsum('bhls,bhsd->bhld', p, vh)                # (B, H, L, dh)
    ctx = ctx.transpose(2, 0, 1, 3).reshape(L, B, D)
    attn = ctx @ out_proj_w.T + out_proj_b

    z = tgt + attn
    mu = z.mean(-1, keepdims=True)
    var = ((z - mu) ** 2).mean(-1, keepdims=True)
    return (z - mu) / np.sqrt(var + 1e-5) * ln_w + ln_b


if __name__ == "__main__":
    # small shapes consistent with the module: L=8 queries, S=16 memory tokens,
    # batch=2, d_model=32, nhead=4 (head_dim=8)
    L, S, B, D, NHEAD = 8, 16, 2, 32, 4

    key = jax.random.PRNGKey(0)
    keys = jax.random.split(key, 12)
    tgt = jax.random.normal(keys[0], (L, B, D), jnp.float32)
    memory = jax.random.normal(keys[1], (S, B, D), jnp.float32)
    query_pos = jax.random.normal(keys[2], (L, B, D), jnp.float32)
    pos = jax.random.normal(keys[3], (S, B, D), jnp.float32)

    # weights: xavier_uniform as in _reset_parameters; biases / LN params are
    # given small random values (instead of PyTorch's zero init) so those code
    # paths are actually exercised by the check — forward semantics unchanged.
    in_proj_w = _xavier_uniform(keys[4], (3 * D, D))
    out_proj_w = _xavier_uniform(keys[5], (D, D))
    in_proj_b = 0.1 * jax.random.normal(keys[6], (3 * D,), jnp.float32)
    out_proj_b = 0.1 * jax.random.normal(keys[7], (D,), jnp.float32)
    ln_w = 1.0 + 0.1 * jax.random.normal(keys[8], (D,), jnp.float32)
    ln_b = 0.1 * jax.random.normal(keys[9], (D,), jnp.float32)

    ref = reference_forward(tgt, memory, in_proj_w, in_proj_b, out_proj_w,
                            out_proj_b, ln_w, ln_b, NHEAD, pos, query_pos)

    # 1) exact-semantics check: f32 MXU operands, single kv tile
    out_f32 = cross_attention_layer_forward(
        tgt, memory, in_proj_w, in_proj_b, out_proj_w, out_proj_b, ln_w, ln_b,
        nhead=NHEAD, pos=pos, query_pos=query_pos, compute_dtype=jnp.float32)
    out_f32 = jax.block_until_ready(out_f32)
    err_f32 = float(np.max(np.abs(np.asarray(out_f32, np.float64) - ref)))
    assert err_f32 < 5e-3, f"f32 path mismatch: max abs err {err_f32}"

    # 2) recommended fast path: bf16 MXU operands with f32 accumulation
    out_bf16 = cross_attention_layer_forward(
        tgt, memory, in_proj_w, in_proj_b, out_proj_w, out_proj_b, ln_w, ln_b,
        nhead=NHEAD, pos=pos, query_pos=query_pos, compute_dtype=jnp.bfloat16)
    out_bf16 = jax.block_until_ready(out_bf16)
    err_bf16 = float(np.max(np.abs(np.asarray(out_bf16, np.float64) - ref)))
    assert err_bf16 < 1e-1, f"bf16 path mismatch: max abs err {err_bf16}"

    # 3) multi-tile + ragged-S path: S=20 memory tokens with kv_tile=8
    #    (3 kv grid steps, last one masked) — exercises the online softmax.
    S2 = 20
    memory2 = jax.random.normal(keys[10], (S2, B, D), jnp.float32)
    pos2 = jax.random.normal(keys[11], (S2, B, D), jnp.float32)
    ref2 = reference_forward(tgt, memory2, in_proj_w, in_proj_b, out_proj_w,
                             out_proj_b, ln_w, ln_b, NHEAD, pos2, query_pos)
    out_tiled = cross_attention_layer_forward(
        tgt, memory2, in_proj_w, in_proj_b, out_proj_w, out_proj_b, ln_w, ln_b,
        nhead=NHEAD, pos=pos2, query_pos=query_pos,
        compute_dtype=jnp.float32, kv_tile=8)
    out_tiled = jax.block_until_ready(out_tiled)
    err_tiled = float(np.max(np.abs(np.asarray(out_tiled, np.float64) - ref2)))
    assert err_tiled < 5e-3, f"tiled path mismatch: max abs err {err_tiled}"

    print("KERNEL_OK")
</pallas_src>

<mosaic_0001>
module attributes {stable_mosaic.version = 11 : i64} {
  func.func @cross_attention_kernel(%arg0: i32, %arg1: i32, %arg2: memref<1x8x32xf32, #tpu.memory_space<vmem>>, %arg3: memref<1x8x32xf32, #tpu.memory_space<vmem>>, %arg4: memref<1x16x32xf32, #tpu.memory_space<vmem>>, %arg5: memref<1x16x32xf32, #tpu.memory_space<vmem>>, %arg6: memref<32x32xf32, #tpu.memory_space<vmem>>, %arg7: memref<32x32xf32, #tpu.memory_space<vmem>>, %arg8: memref<32x32xf32, #tpu.memory_space<vmem>>, %arg9: memref<32x32xf32, #tpu.memory_space<vmem>>, %arg10: memref<1x32xf32, #tpu.memory_space<vmem>>, %arg11: memref<1x32xf32, #tpu.memory_space<vmem>>, %arg12: memref<1x32xf32, #tpu.memory_space<vmem>>, %arg13: memref<1x32xf32, #tpu.memory_space<vmem>>, %arg14: memref<1x32xf32, #tpu.memory_space<vmem>>, %arg15: memref<1x32xf32, #tpu.memory_space<vmem>>, %arg16: memref<1x8x32xf32, #tpu.memory_space<vmem>>, %arg17: memref<8x32xf32, #tpu.memory_space<vmem>>, %arg18: memref<4x8x1xf32, #tpu.memory_space<vmem>>, %arg19: memref<4x8x1xf32, #tpu.memory_space<vmem>>, %arg20: memref<4x8x8xf32, #tpu.memory_space<vmem>>) attributes {dimension_semantics = [#tpu.dimension_semantics<parallel>, #tpu.dimension_semantics<arbitrary>], iteration_bounds = array<i64: 2, 1>, scalar_prefetch = 0 : i64, scratch_operands = 4 : i64, tpu.core_type = #tpu.core_type<tc>, window_params = [{transform_indices = @transform_0, window_bounds = array<i64: 1, 8, 32>}, {transform_indices = @transform_1, window_bounds = array<i64: 1, 8, 32>}, {transform_indices = @transform_2, window_bounds = array<i64: 1, 16, 32>}, {transform_indices = @transform_3, window_bounds = array<i64: 1, 16, 32>}, {pipeline_mode = #tpu.pipeline_mode<synchronous>, transform_indices = @transform_4, window_bounds = array<i64: 32, 32>}, {pipeline_mode = #tpu.pipeline_mode<synchronous>, transform_indices = @transform_5, window_bounds = array<i64: 32, 32>}, {pipeline_mode = #tpu.pipeline_mode<synchronous>, transform_indices = @transform_6, window_bounds = array<i64: 32, 32>}, {pipeline_mode = #tpu.pipeline_mode<synchronous>, transform_indices = @transform_7, window_bounds = array<i64: 32, 32>}, {pipeline_mode = #tpu.pipeline_mode<synchronous>, transform_indices = @transform_8, window_bounds = array<i64: 1, 32>}, {pipeline_mode = #tpu.pipeline_mode<synchronous>, transform_indices = @transform_9, window_bounds = array<i64: 1, 32>}, {pipeline_mode = #tpu.pipeline_mode<synchronous>, transform_indices = @transform_10, window_bounds = array<i64: 1, 32>}, {pipeline_mode = #tpu.pipeline_mode<synchronous>, transform_indices = @transform_11, window_bounds = array<i64: 1, 32>}, {pipeline_mode = #tpu.pipeline_mode<synchronous>, transform_indices = @transform_12, window_bounds = array<i64: 1, 32>}, {pipeline_mode = #tpu.pipeline_mode<synchronous>, transform_indices = @transform_13, window_bounds = array<i64: 1, 32>}, {transform_indices = @transform_14, window_bounds = array<i64: 1, 8, 32>}]} {
    %c0_i32 = arith.constant 0 : i32
    %0 = arith.cmpi eq, %arg1, %c0_i32 : i32
    %1 = arith.extui %0 : i1 to i32
    %c0_i32_0 = arith.constant 0 : i32
    %2 = arith.cmpi ne, %1, %c0_i32_0 : i32
    scf.if %2 {
      %c0_108 = arith.constant 0 : index
      %c0_109 = arith.constant 0 : index
      %c0_110 = arith.constant 0 : index
      %170 = vector.load %arg2[%c0_108, %c0_109, %c0_110] : memref<1x8x32xf32, #tpu.memory_space<vmem>>, vector<1x8x32xf32>
      %171 = vector.shape_cast %170 : vector<1x8x32xf32> to vector<8x32xf32>
      %c0_111 = arith.constant 0 : index
      %c0_112 = arith.constant 0 : index
      %c0_113 = arith.constant 0 : index
      %172 = vector.load %arg3[%c0_111, %c0_112, %c0_113] : memref<1x8x32xf32, #tpu.memory_space<vmem>>, vector<1x8x32xf32>
      %173 = vector.shape_cast %172 : vector<1x8x32xf32> to vector<8x32xf32>
      %174 = arith.addf %171, %173 : vector<8x32xf32>
      %c0_114 = arith.constant 0 : index
      %c0_115 = arith.constant 0 : index
      %175 = vector.load %arg6[%c0_114, %c0_115] : memref<32x32xf32, #tpu.memory_space<vmem>>, vector<32x32xf32>
      %cst_116 = arith.constant dense<0.000000e+00> : vector<8x32xf32>
      %176 = tpu.matmul %174, %175, %cst_116 {dimension_numbers = #tpu.dot_dimension_numbers<[1], [0], [0], [1], [0, 0, 1, 1], [], []>} : vector<8x32xf32>, vector<32x32xf32>, vector<8x32xf32> -> vector<8x32xf32>
      %c0_117 = arith.constant 0 : index
      %c0_118 = arith.constant 0 : index
      %177 = vector.load %arg10[%c0_117, %c0_118] : memref<1x32xf32, #tpu.memory_space<vmem>>, vector<1x32xf32>
      %178 = vector.broadcast %177 : vector<1x32xf32> to vector<8x32xf32>
      %179 = arith.addf %176, %178 : vector<8x32xf32>
      %c0_119 = arith.constant 0 : index
      %c0_120 = arith.constant 0 : index
      %180 = vector.load %arg17[%c0_119, %c0_120] : memref<8x32xf32, #tpu.memory_space<vmem>>, vector<8x32xf32>
      tpu.vector_store %arg17[%c0_119, %c0_120], %179 {strides = array<i32>} : memref<8x32xf32, #tpu.memory_space<vmem>>, vector<8x32xf32>,
      %cst_121 = arith.constant -1.000000e+30 : f32
      %181 = vector.broadcast %cst_121 : f32 to vector<4x8x1xf32>
      %c0_122 = arith.constant 0 : index
      %c0_123 = arith.constant 0 : index
      %c0_124 = arith.constant 0 : index
      %182 = vector.load %arg18[%c0_122, %c0_123, %c0_124] : memref<4x8x1xf32, #tpu.memory_space<vmem>>, vector<4x8x1xf32>
      tpu.vector_store %arg18[%c0_122, %c0_123, %c0_124], %181 {strides = array<i32>} : memref<4x8x1xf32, #tpu.memory_space<vmem>>, vector<4x8x1xf32>,
      %cst_125 = arith.constant 0.000000e+00 : f32
      %183 = vector.broadcast %cst_125 : f32 to vector<4x8x1xf32>
      %c0_126 = arith.constant 0 : index
      %c0_127 = arith.constant 0 : index
      %c0_128 = arith.constant 0 : index
      %184 = vector.load %arg19[%c0_126, %c0_127, %c0_128] : memref<4x8x1xf32, #tpu.memory_space<vmem>>, vector<4x8x1xf32>
      tpu.vector_store %arg19[%c0_126, %c0_127, %c0_128], %183 {strides = array<i32>} : memref<4x8x1xf32, #tpu.memory_space<vmem>>, vector<4x8x1xf32>,
      %cst_129 = arith.constant 0.000000e+00 : f32
      %185 = vector.broadcast %cst_129 : f32 to vector<4x8x8xf32>
      %c0_130 = arith.constant 0 : index
      %c0_131 = arith.constant 0 : index
      %c0_132 = arith.constant 0 : index
      %186 = vector.load %arg20[%c0_130, %c0_131, %c0_132] : memref<4x8x8xf32, #tpu.memory_space<vmem>>, vector<4x8x8xf32>
      tpu.vector_store %arg20[%c0_130, %c0_131, %c0_132], %185 {strides = array<i32>} : memref<4x8x8xf32, #tpu.memory_space<vmem>>, vector<4x8x8xf32>,
    } else {
    }
    %c0 = arith.constant 0 : index
    %c0_1 = arith.constant 0 : index
    %c0_2 = arith.constant 0 : index
    %3 = vector.load %arg4[%c0, %c0_1, %c0_2] : memref<1x16x32xf32, #tpu.memory_space<vmem>>, vector<1x16x32xf32>
    %4 = vector.shape_cast %3 : vector<1x16x32xf32> to vector<16x32xf32>
    %c0_3 = arith.constant 0 : index
    %c0_4 = arith.constant 0 : index
    %c0_5 = arith.constant 0 : index
    %5 = vector.load %arg5[%c0_3, %c0_4, %c0_5] : memref<1x16x32xf32, #tpu.memory_space<vmem>>, vector<1x16x32xf32>
    %6 = vector.shape_cast %5 : vector<1x16x32xf32> to vector<16x32xf32>
    %7 = arith.addf %4, %6 : vector<16x32xf32>
    %c0_6 = arith.constant 0 : index
    %c0_7 = arith.constant 0 : index
    %8 = vector.load %arg7[%c0_6, %c0_7] : memref<32x32xf32, #tpu.memory_space<vmem>>, vector<32x32xf32>
    %cst = arith.constant dense<0.000000e+00> : vector<16x32xf32>
    %9 = tpu.matmul %7, %8, %cst {dimension_numbers = #tpu.dot_dimension_numbers<[1], [0], [0], [1], [0, 0, 1, 1], [], []>} : vector<16x32xf32>, vector<32x32xf32>, vector<16x32xf32> -> vector<16x32xf32>
    %c0_8 = arith.constant 0 : index
    %c0_9 = arith.constant 0 : index
    %10 = vector.load %arg11[%c0_8, %c0_9] : memref<1x32xf32, #tpu.memory_space<vmem>>, vector<1x32xf32>
    %11 = vector.broadcast %10 : vector<1x32xf32> to vector<16x32xf32>
    %12 = arith.addf %9, %11 : vector<16x32xf32>
    %c0_10 = arith.constant 0 : index
    %c0_11 = arith.constant 0 : index
    %13 = vector.load %arg8[%c0_10, %c0_11] : memref<32x32xf32, #tpu.memory_space<vmem>>, vector<32x32xf32>
    %cst_12 = arith.constant dense<0.000000e+00> : vector<16x32xf32>
    %14 = tpu.matmul %4, %13, %cst_12 {dimension_numbers = #tpu.dot_dimension_numbers<[1], [0], [0], [1], [0, 0, 1, 1], [], []>} : vector<16x32xf32>, vector<32x32xf32>, vector<16x32xf32> -> vector<16x32xf32>
    %c0_13 = arith.constant 0 : index
    %c0_14 = arith.constant 0 : index
    %15 = vector.load %arg12[%c0_13, %c0_14] : memref<1x32xf32, #tpu.memory_space<vmem>>, vector<1x32xf32>
    %16 = vector.broadcast %15 : vector<1x32xf32> to vector<16x32xf32>
    %17 = arith.addf %14, %16 : vector<16x32xf32>
    %c0_15 = arith.constant 0 : index
    %c0_16 = arith.constant 0 : index
    %18 = vector.load %arg17[%c0_15, %c0_16] : memref<8x32xf32, #tpu.memory_space<vmem>>, vector<8x32xf32>
    %19 = vector.extract_strided_slice %18 {offsets = [0, 0], sizes = [8, 8], strides = [1, 1]} : vector<8x32xf32> to vector<8x8xf32>
    %20 = vector.extract_strided_slice %12 {offsets = [0, 0], sizes = [16, 8], strides = [1, 1]} : vector<16x32xf32> to vector<16x8xf32>
    %cst_17 = arith.constant dense<0.000000e+00> : vector<8x16xf32>
    %21 = tpu.matmul %19, %20, %cst_17 {dimension_numbers = #tpu.dot_dimension_numbers<[1], [1], [0], [0], [0, 0, 1, 0], [], []>} : vector<8x8xf32>, vector<16x8xf32>, vector<8x16xf32> -> vector<8x16xf32>
    %cst_18 = arith.constant 0.353553385 : f32
    %22 = vector.broadcast %cst_18 : f32 to vector<8x16xf32>
    %23 = arith.mulf %21, %22 : vector<8x16xf32>
    %c0_19 = arith.constant 0 : index
    %c0_20 = arith.constant 0 : index
    %c0_21 = arith.constant 0 : index
    %24 = vector.load %arg18[%c0_19, %c0_20, %c0_21] : memref<4x8x1xf32, #tpu.memory_space<vmem>>, vector<1x8x1xf32>
    %25 = vector.shape_cast %24 : vector<1x8x1xf32> to vector<8x1xf32>
    %cst_22 = arith.constant dense<0xFF800000> : vector<8xf32>
    %26 = vector.multi_reduction <maximumf>, %23, %cst_22 [1] : vector<8x16xf32> to vector<8xf32>
    %27 = vector.shape_cast %26 : vector<8xf32> to vector<8x1xf32>
    %28 = arith.maximumf %25, %27 : vector<8x1xf32>
    %29 = arith.subf %25, %28 : vector<8x1xf32>
    %30 = math.exp %29 : vector<8x1xf32>
    %31 = vector.broadcast %28 : vector<8x1xf32> to vector<8x16xf32>
    %32 = arith.subf %23, %31 : vector<8x16xf32>
    %33 = math.exp %32 : vector<8x16xf32>
    %c0_23 = arith.constant 0 : index
    %c0_24 = arith.constant 0 : index
    %c0_25 = arith.constant 0 : index
    %34 = vector.load %arg19[%c0_23, %c0_24, %c0_25] : memref<4x8x1xf32, #tpu.memory_space<vmem>>, vector<1x8x1xf32>
    %35 = vector.shape_cast %34 : vector<1x8x1xf32> to vector<8x1xf32>
    %36 = arith.mulf %30, %35 : vector<8x1xf32>
    %cst_26 = arith.constant dense<0.000000e+00> : vector<8xf32>
    %37 = vector.multi_reduction <add>, %33, %cst_26 [1] : vector<8x16xf32> to vector<8xf32>
    %38 = vector.shape_cast %37 : vector<8xf32> to vector<8x1xf32>
    %39 = arith.addf %36, %38 : vector<8x1xf32>
    %c0_27 = arith.constant 0 : index
    %c0_28 = arith.constant 0 : index
    %c0_29 = arith.constant 0 : index
    %40 = vector.load %arg19[%c0_27, %c0_28, %c0_29] : memref<4x8x1xf32, #tpu.memory_space<vmem>>, vector<1x8x1xf32>
    %41 = vector.shape_cast %40 : vector<1x8x1xf32> to vector<8x1xf32>
    %42 = vector.shape_cast %39 : vector<8x1xf32> to vector<1x8x1xf32>
    tpu.vector_store %arg19[%c0_27, %c0_28, %c0_29], %42 {strides = array<i32>} : memref<4x8x1xf32, #tpu.memory_space<vmem>>, vector<1x8x1xf32>,
    %c0_30 = arith.constant 0 : index
    %c0_31 = arith.constant 0 : index
    %c0_32 = arith.constant 0 : index
    %43 = vector.load %arg20[%c0_30, %c0_31, %c0_32] : memref<4x8x8xf32, #tpu.memory_space<vmem>>, vector<1x8x8xf32>
    %44 = vector.shape_cast %43 : vector<1x8x8xf32> to vector<8x8xf32>
    %45 = vector.broadcast %30 : vector<8x1xf32> to vector<8x8xf32>
    %46 = arith.mulf %45, %44 : vector<8x8xf32>
    %47 = vector.extract_strided_slice %17 {offsets = [0, 0], sizes = [16, 8], strides = [1, 1]} : vector<16x32xf32> to vector<16x8xf32>
    %cst_33 = arith.constant dense<0.000000e+00> : vector<8x8xf32>
    %48 = tpu.matmul %33, %47, %cst_33 {dimension_numbers = #tpu.dot_dimension_numbers<[1], [0], [0], [1], [0, 0, 1, 1], [], []>} : vector<8x16xf32>, vector<16x8xf32>, vector<8x8xf32> -> vector<8x8xf32>
    %49 = arith.addf %46, %48 : vector<8x8xf32>
    %c0_34 = arith.constant 0 : index
    %c0_35 = arith.constant 0 : index
    %c0_36 = arith.constant 0 : index
    %50 = vector.load %arg20[%c0_34, %c0_35, %c0_36] : memref<4x8x8xf32, #tpu.memory_space<vmem>>, vector<1x8x8xf32>
    %51 = vector.shape_cast %50 : vector<1x8x8xf32> to vector<8x8xf32>
    %52 = vector.shape_cast %49 : vector<8x8xf32> to vector<1x8x8xf32>
    tpu.vector_store %arg20[%c0_34, %c0_35, %c0_36], %52 {strides = array<i32>} : memref<4x8x8xf32, #tpu.memory_space<vmem>>, vector<1x8x8xf32>,
    %c0_37 = arith.constant 0 : index
    %c0_38 = arith.constant 0 : index
    %c0_39 = arith.constant 0 : index
    %53 = vector.load %arg18[%c0_37, %c0_38, %c0_39] : memref<4x8x1xf32, #tpu.memory_space<vmem>>, vector<1x8x1xf32>
    %54 = vector.shape_cast %53 : vector<1x8x1xf32> to vector<8x1xf32>
    %55 = vector.shape_cast %28 : vector<8x1xf32> to vector<1x8x1xf32>
    tpu.vector_store %arg18[%c0_37, %c0_38, %c0_39], %55 {strides = array<i32>} : memref<4x8x1xf32, #tpu.memory_space<vmem>>, vector<1x8x1xf32>,
    %56 = vector.extract_strided_slice %18 {offsets = [0, 8], sizes = [8, 8], strides = [1, 1]} : vector<8x32xf32> to vector<8x8xf32>
    %57 = vector.extract_strided_slice %12 {offsets = [0, 8], sizes = [16, 8], strides = [1, 1]} : vector<16x32xf32> to vector<16x8xf32>
    %cst_40 = arith.constant dense<0.000000e+00> : vector<8x16xf32>
    %58 = tpu.matmul %56, %57, %cst_40 {dimension_numbers = #tpu.dot_dimension_numbers<[1], [1], [0], [0], [0, 0, 1, 0], [], []>} : vector<8x8xf32>, vector<16x8xf32>, vector<8x16xf32> -> vector<8x16xf32>
    %cst_41 = arith.constant 0.353553385 : f32
    %59 = vector.broadcast %cst_41 : f32 to vector<8x16xf32>
    %60 = arith.mulf %58, %59 : vector<8x16xf32>
    %c1 = arith.constant 1 : index
    %c0_42 = arith.constant 0 : index
    %c0_43 = arith.constant 0 : index
    %61 = vector.load %arg18[%c1, %c0_42, %c0_43] : memref<4x8x1xf32, #tpu.memory_space<vmem>>, vector<1x8x1xf32>
    %62 = vector.shape_cast %61 : vector<1x8x1xf32> to vector<8x1xf32>
    %cst_44 = arith.constant dense<0xFF800000> : vector<8xf32>
    %63 = vector.multi_reduction <maximumf>, %60, %cst_44 [1] : vector<8x16xf32> to vector<8xf32>
    %64 = vector.shape_cast %63 : vector<8xf32> to vector<8x1xf32>
    %65 = arith.maximumf %62, %64 : vector<8x1xf32>
    %66 = arith.subf %62, %65 : vector<8x1xf32>
    %67 = math.exp %66 : vector<8x1xf32>
    %68 = vector.broadcast %65 : vector<8x1xf32> to vector<8x16xf32>
    %69 = arith.subf %60, %68 : vector<8x16xf32>
    %70 = math.exp %69 : vector<8x16xf32>
    %c1_45 = arith.constant 1 : index
    %c0_46 = arith.constant 0 : index
    %c0_47 = arith.constant 0 : index
    %71 = vector.load %arg19[%c1_45, %c0_46, %c0_47] : memref<4x8x1xf32, #tpu.memory_space<vmem>>, vector<1x8x1xf32>
    %72 = vector.shape_cast %71 : vector<1x8x1xf32> to vector<8x1xf32>
    %73 = arith.mulf %67, %72 : vector<8x1xf32>
    %cst_48 = arith.constant dense<0.000000e+00> : vector<8xf32>
    %74 = vector.multi_reduction <add>, %70, %cst_48 [1] : vector<8x16xf32> to vector<8xf32>
    %75 = vector.shape_cast %74 : vector<8xf32> to vector<8x1xf32>
    %76 = arith.addf %73, %75 : vector<8x1xf32>
    %c1_49 = arith.constant 1 : index
    %c0_50 = arith.constant 0 : index
    %c0_51 = arith.constant 0 : index
    %77 = vector.load %arg19[%c1_49, %c0_50, %c0_51] : memref<4x8x1xf32, #tpu.memory_space<vmem>>, vector<1x8x1xf32>
    %78 = vector.shape_cast %77 : vector<1x8x1xf32> to vector<8x1xf32>
    %79 = vector.shape_cast %76 : vector<8x1xf32> to vector<1x8x1xf32>
    tpu.vector_store %arg19[%c1_49, %c0_50, %c0_51], %79 {strides = array<i32>} : memref<4x8x1xf32, #tpu.memory_space<vmem>>, vector<1x8x1xf32>,
    %c1_52 = arith.constant 1 : index
    %c0_53 = arith.constant 0 : index
    %c0_54 = arith.constant 0 : index
    %80 = vector.load %arg20[%c1_52, %c0_53, %c0_54] : memref<4x8x8xf32, #tpu.memory_space<vmem>>, vector<1x8x8xf32>
    %81 = vector.shape_cast %80 : vector<1x8x8xf32> to vector<8x8xf32>
    %82 = vector.broadcast %67 : vector<8x1xf32> to vector<8x8xf32>
    %83 = arith.mulf %82, %81 : vector<8x8xf32>
    %84 = vector.extract_strided_slice %17 {offsets = [0, 8], sizes = [16, 8], strides = [1, 1]} : vector<16x32xf32> to vector<16x8xf32>
    %cst_55 = arith.constant dense<0.000000e+00> : vector<8x8xf32>
    %85 = tpu.matmul %70, %84, %cst_55 {dimension_numbers = #tpu.dot_dimension_numbers<[1], [0], [0], [1], [0, 0, 1, 1], [], []>} : vector<8x16xf32>, vector<16x8xf32>, vector<8x8xf32> -> vector<8x8xf32>
    %86 = arith.addf %83, %85 : vector<8x8xf32>
    %c1_56 = arith.constant 1 : index
    %c0_57 = arith.constant 0 : index
    %c0_58 = arith.constant 0 : index
    %87 = vector.load %arg20[%c1_56, %c0_57, %c0_58] : memref<4x8x8xf32, #tpu.memory_space<vmem>>, vector<1x8x8xf32>
    %88 = vector.shape_cast %87 : vector<1x8x8xf32> to vector<8x8xf32>
    %89 = vector.shape_cast %86 : vector<8x8xf32> to vector<1x8x8xf32>
    tpu.vector_store %arg20[%c1_56, %c0_57, %c0_58], %89 {strides = array<i32>} : memref<4x8x8xf32, #tpu.memory_space<vmem>>, vector<1x8x8xf32>,
    %c1_59 = arith.constant 1 : index
    %c0_60 = arith.constant 0 : index
    %c0_61 = arith.constant 0 : index
    %90 = vector.load %arg18[%c1_59, %c0_60, %c0_61] : memref<4x8x1xf32, #tpu.memory_space<vmem>>, vector<1x8x1xf32>
    %91 = vector.shape_cast %90 : vector<1x8x1xf32> to vector<8x1xf32>
    %92 = vector.shape_cast %65 : vector<8x1xf32> to vector<1x8x1xf32>
    tpu.vector_store %arg18[%c1_59, %c0_60, %c0_61], %92 {strides = array<i32>} : memref<4x8x1xf32, #tpu.memory_space<vmem>>, vector<1x8x1xf32>,
    %93 = vector.extract_strided_slice %18 {offsets = [0, 16], sizes = [8, 8], strides = [1, 1]} : vector<8x32xf32> to vector<8x8xf32>
    %94 = vector.extract_strided_slice %12 {offsets = [0, 16], sizes = [16, 8], strides = [1, 1]} : vector<16x32xf32> to vector<16x8xf32>
    %cst_62 = arith.constant dense<0.000000e+00> : vector<8x16xf32>
    %95 = tpu.matmul %93, %94, %cst_62 {dimension_numbers = #tpu.dot_dimension_numbers<[1], [1], [0], [0], [0, 0, 1, 0], [], []>} : vector<8x8xf32>, vector<16x8xf32>, vector<8x16xf32> -> vector<8x16xf32>
    %cst_63 = arith.constant 0.353553385 : f32
    %96 = vector.broadcast %cst_63 : f32 to vector<8x16xf32>
    %97 = arith.mulf %95, %96 : vector<8x16xf32>
    %c2 = arith.constant 2 : index
    %c0_64 = arith.constant 0 : index
    %c0_65 = arith.constant 0 : index
    %98 = vector.load %arg18[%c2, %c0_64, %c0_65] : memref<4x8x1xf32, #tpu.memory_space<vmem>>, vector<1x8x1xf32>
    %99 = vector.shape_cast %98 : vector<1x8x1xf32> to vector<8x1xf32>
    %cst_66 = arith.constant dense<0xFF800000> : vector<8xf32>
    %100 = vector.multi_reduction <maximumf>, %97, %cst_66 [1] : vector<8x16xf32> to vector<8xf32>
    %101 = vector.shape_cast %100 : vector<8xf32> to vector<8x1xf32>
    %102 = arith.maximumf %99, %101 : vector<8x1xf32>
    %103 = arith.subf %99, %102 : vector<8x1xf32>
    %104 = math.exp %103 : vector<8x1xf32>
    %105 = vector.broadcast %102 : vector<8x1xf32> to vector<8x16xf32>
    %106 = arith.subf %97, %105 : vector<8x16xf32>
    %107 = math.exp %106 : vector<8x16xf32>
    %c2_67 = arith.constant 2 : index
    %c0_68 = arith.constant 0 : index
    %c0_69 = arith.constant 0 : index
    %108 = vector.load %arg19[%c2_67, %c0_68, %c0_69] : memref<4x8x1xf32, #tpu.memory_space<vmem>>, vector<1x8x1xf32>
    %109 = vector.shape_cast %108 : vector<1x8x1xf32> to vector<8x1xf32>
    %110 = arith.mulf %104, %109 : vector<8x1xf32>
    %cst_70 = arith.constant dense<0.000000e+00> : vector<8xf32>
    %111 = vector.multi_reduction <add>, %107, %cst_70 [1] : vector<8x16xf32> to vector<8xf32>
    %112 = vector.shape_cast %111 : vector<8xf32> to vector<8x1xf32>
    %113 = arith.addf %110, %112 : vector<8x1xf32>
    %c2_71 = arith.constant 2 : index
    %c0_72 = arith.constant 0 : index
    %c0_73 = arith.constant 0 : index
    %114 = vector.load %arg19[%c2_71, %c0_72, %c0_73] : memref<4x8x1xf32, #tpu.memory_space<vmem>>, vector<1x8x1xf32>
    %115 = vector.shape_cast %114 : vector<1x8x1xf32> to vector<8x1xf32>
    %116 = vector.shape_cast %113 : vector<8x1xf32> to vector<1x8x1xf32>
    tpu.vector_store %arg19[%c2_71, %c0_72, %c0_73], %116 {strides = array<i32>} : memref<4x8x1xf32, #tpu.memory_space<vmem>>, vector<1x8x1xf32>,
    %c2_74 = arith.constant 2 : index
    %c0_75 = arith.constant 0 : index
    %c0_76 = arith.constant 0 : index
    %117 = vector.load %arg20[%c2_74, %c0_75, %c0_76] : memref<4x8x8xf32, #tpu.memory_space<vmem>>, vector<1x8x8xf32>
    %118 = vector.shape_cast %117 : vector<1x8x8xf32> to vector<8x8xf32>
    %119 = vector.broadcast %104 : vector<8x1xf32> to vector<8x8xf32>
    %120 = arith.mulf %119, %118 : vector<8x8xf32>
    %121 = vector.extract_strided_slice %17 {offsets = [0, 16], sizes = [16, 8], strides = [1, 1]} : vector<16x32xf32> to vector<16x8xf32>
    %cst_77 = arith.constant dense<0.000000e+00> : vector<8x8xf32>
    %122 = tpu.matmul %107, %121, %cst_77 {dimension_numbers = #tpu.dot_dimension_numbers<[1], [0], [0], [1], [0, 0, 1, 1], [], []>} : vector<8x16xf32>, vector<16x8xf32>, vector<8x8xf32> -> vector<8x8xf32>
    %123 = arith.addf %120, %122 : vector<8x8xf32>
    %c2_78 = arith.constant 2 : index
    %c0_79 = arith.constant 0 : index
    %c0_80 = arith.constant 0 : index
    %124 = vector.load %arg20[%c2_78, %c0_79, %c0_80] : memref<4x8x8xf32, #tpu.memory_space<vmem>>, vector<1x8x8xf32>
    %125 = vector.shape_cast %124 : vector<1x8x8xf32> to vector<8x8xf32>
    %126 = vector.shape_cast %123 : vector<8x8xf32> to vector<1x8x8xf32>
    tpu.vector_store %arg20[%c2_78, %c0_79, %c0_80], %126 {strides = array<i32>} : memref<4x8x8xf32, #tpu.memory_space<vmem>>, vector<1x8x8xf32>,
    %c2_81 = arith.constant 2 : index
    %c0_82 = arith.constant 0 : index
    %c0_83 = arith.constant 0 : index
    %127 = vector.load %arg18[%c2_81, %c0_82, %c0_83] : memref<4x8x1xf32, #tpu.memory_space<vmem>>, vector<1x8x1xf32>
    %128 = vector.shape_cast %127 : vector<1x8x1xf32> to vector<8x1xf32>
    %129 = vector.shape_cast %102 : vector<8x1xf32> to vector<1x8x1xf32>
    tpu.vector_store %arg18[%c2_81, %c0_82, %c0_83], %129 {strides = array<i32>} : memref<4x8x1xf32, #tpu.memory_space<vmem>>, vector<1x8x1xf32>,
    %130 = vector.extract_strided_slice %18 {offsets = [0, 24], sizes = [8, 8], strides = [1, 1]} : vector<8x32xf32> to vector<8x8xf32>
    %131 = vector.extract_strided_slice %12 {offsets = [0, 24], sizes = [16, 8], strides = [1, 1]} : vector<16x32xf32> to vector<16x8xf32>
    %cst_84 = arith.constant dense<0.000000e+00> : vector<8x16xf32>
    %132 = tpu.matmul %130, %131, %cst_84 {dimension_numbers = #tpu.dot_dimension_numbers<[1], [1], [0], [0], [0, 0, 1, 0], [], []>} : vector<8x8xf32>, vector<16x8xf32>, vector<8x16xf32> -> vector<8x16xf32>
    %cst_85 = arith.constant 0.353553385 : f32
    %133 = vector.broadcast %cst_85 : f32 to vector<8x16xf32>
    %134 = arith.mulf %132, %133 : vector<8x16xf32>
    %c3 = arith.constant 3 : index
    %c0_86 = arith.constant 0 : index
    %c0_87 = arith.constant 0 : index
    %135 = vector.load %arg18[%c3, %c0_86, %c0_87] : memref<4x8x1xf32, #tpu.memory_space<vmem>>, vector<1x8x1xf32>
    %136 = vector.shape_cast %135 : vector<1x8x1xf32> to vector<8x1xf32>
    %cst_88 = arith.constant dense<0xFF800000> : vector<8xf32>
    %137 = vector.multi_reduction <maximumf>, %134, %cst_88 [1] : vector<8x16xf32> to vector<8xf32>
    %138 = vector.shape_cast %137 : vector<8xf32> to vector<8x1xf32>
    %139 = arith.maximumf %136, %138 : vector<8x1xf32>
    %140 = arith.subf %136, %139 : vector<8x1xf32>
    %141 = math.exp %140 : vector<8x1xf32>
    %142 = vector.broadcast %139 : vector<8x1xf32> to vector<8x16xf32>
    %143 = arith.subf %134, %142 : vector<8x16xf32>
    %144 = math.exp %143 : vector<8x16xf32>
    %c3_89 = arith.constant 3 : index
    %c0_90 = arith.constant 0 : index
    %c0_91 = arith.constant 0 : index
    %145 = vector.load %arg19[%c3_89, %c0_90, %c0_91] : memref<4x8x1xf32, #tpu.memory_space<vmem>>, vector<1x8x1xf32>
    %146 = vector.shape_cast %145 : vector<1x8x1xf32> to vector<8x1xf32>
    %147 = arith.mulf %141, %146 : vector<8x1xf32>
    %cst_92 = arith.constant dense<0.000000e+00> : vector<8xf32>
    %148 = vector.multi_reduction <add>, %144, %cst_92 [1] : vector<8x16xf32> to vector<8xf32>
    %149 = vector.shape_cast %148 : vector<8xf32> to vector<8x1xf32>
    %150 = arith.addf %147, %149 : vector<8x1xf32>
    %c3_93 = arith.constant 3 : index
    %c0_94 = arith.constant 0 : index
    %c0_95 = arith.constant 0 : index
    %151 = vector.load %arg19[%c3_93, %c0_94, %c0_95] : memref<4x8x1xf32, #tpu.memory_space<vmem>>, vector<1x8x1xf32>
    %152 = vector.shape_cast %151 : vector<1x8x1xf32> to vector<8x1xf32>
    %153 = vector.shape_cast %150 : vector<8x1xf32> to vector<1x8x1xf32>
    tpu.vector_store %arg19[%c3_93, %c0_94, %c0_95], %153 {strides = array<i32>} : memref<4x8x1xf32, #tpu.memory_space<vmem>>, vector<1x8x1xf32>,
    %c3_96 = arith.constant 3 : index
    %c0_97 = arith.constant 0 : index
    %c0_98 = arith.constant 0 : index
    %154 = vector.load %arg20[%c3_96, %c0_97, %c0_98] : memref<4x8x8xf32, #tpu.memory_space<vmem>>, vector<1x8x8xf32>
    %155 = vector.shape_cast %154 : vector<1x8x8xf32> to vector<8x8xf32>
    %156 = vector.broadcast %141 : vector<8x1xf32> to vector<8x8xf32>
    %157 = arith.mulf %156, %155 : vector<8x8xf32>
    %158 = vector.extract_strided_slice %17 {offsets = [0, 24], sizes = [16, 8], strides = [1, 1]} : vector<16x32xf32> to vector<16x8xf32>
    %cst_99 = arith.constant dense<0.000000e+00> : vector<8x8xf32>
    %159 = tpu.matmul %144, %158, %cst_99 {dimension_numbers = #tpu.dot_dimension_numbers<[1], [0], [0], [1], [0, 0, 1, 1], [], []>} : vector<8x16xf32>, vector<16x8xf32>, vector<8x8xf32> -> vector<8x8xf32>
    %160 = arith.addf %157, %159 : vector<8x8xf32>
    %c3_100 = arith.constant 3 : index
    %c0_101 = arith.constant 0 : index
    %c0_102 = arith.constant 0 : index
    %161 = vector.load %arg20[%c3_100, %c0_101, %c0_102] : memref<4x8x8xf32, #tpu.memory_space<vmem>>, vector<1x8x8xf32>
    %162 = vector.shape_cast %161 : vector<1x8x8xf32> to vector<8x8xf32>
    %163 = vector.shape_cast %160 : vector<8x8xf32> to vector<1x8x8xf32>
    tpu.vector_store %arg20[%c3_100, %c0_101, %c0_102], %163 {strides = array<i32>} : memref<4x8x8xf32, #tpu.memory_space<vmem>>, vector<1x8x8xf32>,
    %c3_103 = arith.constant 3 : index
    %c0_104 = arith.constant 0 : index
    %c0_105 = arith.constant 0 : index
    %164 = vector.load %arg18[%c3_103, %c0_104, %c0_105] : memref<4x8x1xf32, #tpu.memory_space<vmem>>, vector<1x8x1xf32>
    %165 = vector.shape_cast %164 : vector<1x8x1xf32> to vector<8x1xf32>
    %166 = vector.shape_cast %139 : vector<8x1xf32> to vector<1x8x1xf32>
    tpu.vector_store %arg18[%c3_103, %c0_104, %c0_105], %166 {strides = array<i32>} : memref<4x8x1xf32, #tpu.memory_space<vmem>>, vector<1x8x1xf32>,
    %c0_i32_106 = arith.constant 0 : i32
    %167 = arith.cmpi eq, %arg1, %c0_i32_106 : i32
    %168 = arith.extui %167 : i1 to i32
    %c0_i32_107 = arith.constant 0 : i32
    %169 = arith.cmpi ne, %168, %c0_i32_107 : i32
    scf.if %169 {
      %c0_108 = arith.constant 0 : index
      %c0_109 = arith.constant 0 : index
      %170 = vector.load %arg9[%c0_108, %c0_109] : memref<32x32xf32, #tpu.memory_space<vmem>>, vector<32x32xf32>
      %cst_110 = arith.constant 0.000000e+00 : f32
      %171 = vector.broadcast %cst_110 : f32 to vector<8x32xf32>
      %c0_111 = arith.constant 0 : index
      %c0_112 = arith.constant 0 : index
      %c0_113 = arith.constant 0 : index
      %172 = vector.load %arg20[%c0_111, %c0_112, %c0_113] : memref<4x8x8xf32, #tpu.memory_space<vmem>>, vector<1x8x8xf32>
      %173 = vector.shape_cast %172 : vector<1x8x8xf32> to vector<8x8xf32>
      %c0_114 = arith.constant 0 : index
      %c0_115 = arith.constant 0 : index
      %c0_116 = arith.constant 0 : index
      %174 = vector.load %arg19[%c0_114, %c0_115, %c0_116] : memref<4x8x1xf32, #tpu.memory_space<vmem>>, vector<1x8x1xf32>
      %175 = vector.shape_cast %174 : vector<1x8x1xf32> to vector<8x1xf32>
      %176 = tpu.reciprocal %175 : vector<8x1xf32> -> vector<8x1xf32>
      %177 = vector.broadcast %176 : vector<8x1xf32> to vector<8x8xf32>
      %178 = arith.mulf %173, %177 : vector<8x8xf32>
      %179 = vector.extract_strided_slice %170 {offsets = [0, 0], sizes = [8, 32], strides = [1, 1]} : vector<32x32xf32> to vector<8x32xf32>
      %cst_117 = arith.constant dense<0.000000e+00> : vector<8x32xf32>
      %180 = tpu.matmul %178, %179, %cst_117 {dimension_numbers = #tpu.dot_dimension_numbers<[1], [0], [0], [1], [0, 0, 1, 1], [], []>} : vector<8x8xf32>, vector<8x32xf32>, vector<8x32xf32> -> vector<8x32xf32>
      %181 = arith.addf %171, %180 : vector<8x32xf32>
      %c1_118 = arith.constant 1 : index
      %c0_119 = arith.constant 0 : index
      %c0_120 = arith.constant 0 : index
      %182 = vector.load %arg20[%c1_118, %c0_119, %c0_120] : memref<4x8x8xf32, #tpu.memory_space<vmem>>, vector<1x8x8xf32>
      %183 = vector.shape_cast %182 : vector<1x8x8xf32> to vector<8x8xf32>
      %c1_121 = arith.constant 1 : index
      %c0_122 = arith.constant 0 : index
      %c0_123 = arith.constant 0 : index
      %184 = vector.load %arg19[%c1_121, %c0_122, %c0_123] : memref<4x8x1xf32, #tpu.memory_space<vmem>>, vector<1x8x1xf32>
      %185 = vector.shape_cast %184 : vector<1x8x1xf32> to vector<8x1xf32>
      %186 = tpu.reciprocal %185 : vector<8x1xf32> -> vector<8x1xf32>
      %187 = vector.broadcast %186 : vector<8x1xf32> to vector<8x8xf32>
      %188 = arith.mulf %183, %187 : vector<8x8xf32>
      %189 = vector.extract_strided_slice %170 {offsets = [8, 0], sizes = [8, 32], strides = [1, 1]} : vector<32x32xf32> to vector<8x32xf32>
      %cst_124 = arith.constant dense<0.000000e+00> : vector<8x32xf32>
      %190 = tpu.matmul %188, %189, %cst_124 {dimension_numbers = #tpu.dot_dimension_numbers<[1], [0], [0], [1], [0, 0, 1, 1], [], []>} : vector<8x8xf32>, vector<8x32xf32>, vector<8x32xf32> -> vector<8x32xf32>
      %191 = arith.addf %181, %190 : vector<8x32xf32>
      %c2_125 = arith.constant 2 : index
      %c0_126 = arith.constant 0 : index
      %c0_127 = arith.constant 0 : index
      %192 = vector.load %arg20[%c2_125, %c0_126, %c0_127] : memref<4x8x8xf32, #tpu.memory_space<vmem>>, vector<1x8x8xf32>
      %193 = vector.shape_cast %192 : vector<1x8x8xf32> to vector<8x8xf32>
      %c2_128 = arith.constant 2 : index
      %c0_129 = arith.constant 0 : index
      %c0_130 = arith.constant 0 : index
      %194 = vector.load %arg19[%c2_128, %c0_129, %c0_130] : memref<4x8x1xf32, #tpu.memory_space<vmem>>, vector<1x8x1xf32>
      %195 = vector.shape_cast %194 : vector<1x8x1xf32> to vector<8x1xf32>
      %196 = tpu.reciprocal %195 : vector<8x1xf32> -> vector<8x1xf32>
      %197 = vector.broadcast %196 : vector<8x1xf32> to vector<8x8xf32>
      %198 = arith.mulf %193, %197 : vector<8x8xf32>
      %199 = vector.extract_strided_slice %170 {offsets = [16, 0], sizes = [8, 32], strides = [1, 1]} : vector<32x32xf32> to vector<8x32xf32>
      %cst_131 = arith.constant dense<0.000000e+00> : vector<8x32xf32>
      %200 = tpu.matmul %198, %199, %cst_131 {dimension_numbers = #tpu.dot_dimension_numbers<[1], [0], [0], [1], [0, 0, 1, 1], [], []>} : vector<8x8xf32>, vector<8x32xf32>, vector<8x32xf32> -> vector<8x32xf32>
      %201 = arith.addf %191, %200 : vector<8x32xf32>
      %c3_132 = arith.constant 3 : index
      %c0_133 = arith.constant 0 : index
      %c0_134 = arith.constant 0 : index
      %202 = vector.load %arg20[%c3_132, %c0_133, %c0_134] : memref<4x8x8xf32, #tpu.memory_space<vmem>>, vector<1x8x8xf32>
      %203 = vector.shape_cast %202 : vector<1x8x8xf32> to vector<8x8xf32>
      %c3_135 = arith.constant 3 : index
      %c0_136 = arith.constant 0 : index
      %c0_137 = arith.constant 0 : index
      %204 = vector.load %arg19[%c3_135, %c0_136, %c0_137] : memref<4x8x1xf32, #tpu.memory_space<vmem>>, vector<1x8x1xf32>
      %205 = vector.shape_cast %204 : vector<1x8x1xf32> to vector<8x1xf32>
      %206 = tpu.reciprocal %205 : vector<8x1xf32> -> vector<8x1xf32>
      %207 = vector.broadcast %206 : vector<8x1xf32> to vector<8x8xf32>
      %208 = arith.mulf %203, %207 : vector<8x8xf32>
      %209 = vector.extract_strided_slice %170 {offsets = [24, 0], sizes = [8, 32], strides = [1, 1]} : vector<32x32xf32> to vector<8x32xf32>
      %cst_138 = arith.constant dense<0.000000e+00> : vector<8x32xf32>
      %210 = tpu.matmul %208, %209, %cst_138 {dimension_numbers = #tpu.dot_dimension_numbers<[1], [0], [0], [1], [0, 0, 1, 1], [], []>} : vector<8x8xf32>, vector<8x32xf32>, vector<8x32xf32> -> vector<8x32xf32>
      %211 = arith.addf %201, %210 : vector<8x32xf32>
      %c0_139 = arith.constant 0 : index
      %c0_140 = arith.constant 0 : index
      %c0_141 = arith.constant 0 : index
      %212 = vector.load %arg2[%c0_139, %c0_140, %c0_141] : memref<1x8x32xf32, #tpu.memory_space<vmem>>, vector<1x8x32xf32>
      %213 = vector.shape_cast %212 : vector<1x8x32xf32> to vector<8x32xf32>
      %214 = arith.addf %213, %211 : vector<8x32xf32>
      %c0_142 = arith.constant 0 : index
      %c0_143 = arith.constant 0 : index
      %215 = vector.load %arg13[%c0_142, %c0_143] : memref<1x32xf32, #tpu.memory_space<vmem>>, vector<1x32xf32>
      %216 = vector.broadcast %215 : vector<1x32xf32> to vector<8x32xf32>
      %217 = arith.addf %214, %216 : vector<8x32xf32>
      %cst_144 = arith.constant dense<0.000000e+00> : vector<8xf32>
      %218 = vector.multi_reduction <add>, %217, %cst_144 [1] : vector<8x32xf32> to vector<8xf32>
      %219 = vector.shape_cast %218 : vector<8xf32> to vector<8x1xf32>
      %cst_145 = arith.constant 3.200000e+01 : f32
      %220 = vector.broadcast %cst_145 : f32 to vector<8x1xf32>
      %221 = arith.divf %219, %220 : vector<8x1xf32>
      %222 = vector.broadcast %221 : vector<8x1xf32> to vector<8x32xf32>
      %223 = arith.subf %217, %222 : vector<8x32xf32>
      %224 = arith.mulf %223, %223 : vector<8x32xf32>
      %cst_146 = arith.constant dense<0.000000e+00> : vector<8xf32>
      %225 = vector.multi_reduction <add>, %224, %cst_146 [1] : vector<8x32xf32> to vector<8xf32>
      %226 = vector.shape_cast %225 : vector<8xf32> to vector<8x1xf32>
      %cst_147 = arith.constant 3.200000e+01 : f32
      %227 = vector.broadcast %cst_147 : f32 to vector<8x1xf32>
      %228 = arith.divf %226, %227 : vector<8x1xf32>
      %cst_148 = arith.constant 9.99999974E-6 : f32
      %229 = vector.broadcast %cst_148 : f32 to vector<8x1xf32>
      %230 = arith.addf %228, %229 : vector<8x1xf32>
      %231 = math.rsqrt %230 : vector<8x1xf32>
      %232 = vector.broadcast %231 : vector<8x1xf32> to vector<8x32xf32>
      %233 = arith.mulf %223, %232 : vector<8x32xf32>
      %c0_149 = arith.constant 0 : index
      %c0_150 = arith.constant 0 : index
      %234 = vector.load %arg14[%c0_149, %c0_150] : memref<1x32xf32, #tpu.memory_space<vmem>>, vector<1x32xf32>
      %235 = vector.broadcast %234 : vector<1x32xf32> to vector<8x32xf32>
      %236 = arith.mulf %233, %235 : vector<8x32xf32>
      %c0_151 = arith.constant 0 : index
      %c0_152 = arith.constant 0 : index
      %237 = vector.load %arg15[%c0_151, %c0_152] : memref<1x32xf32, #tpu.memory_space<vmem>>, vector<1x32xf32>
      %238 = vector.broadcast %237 : vector<1x32xf32> to vector<8x32xf32>
      %239 = arith.addf %236, %238 : vector<8x32xf32>
      %c0_153 = arith.constant 0 : index
      %c0_154 = arith.constant 0 : index
      %c0_155 = arith.constant 0 : index
      %240 = vector.load %arg16[%c0_153, %c0_154, %c0_155] : memref<1x8x32xf32, #tpu.memory_space<vmem>>, vector<1x8x32xf32>
      %241 = vector.shape_cast %240 : vector<1x8x32xf32> to vector<8x32xf32>
      %242 = vector.shape_cast %239 : vector<8x32xf32> to vector<1x8x32xf32>
      tpu.vector_store %arg16[%c0_153, %c0_154, %c0_155], %242 {strides = array<i32>} : memref<1x8x32xf32, #tpu.memory_space<vmem>>, vector<1x8x32xf32>,
    } else {
    }
    return
  }
  func.func @transform_0(%arg0: i32, %arg1: i32) -> (i32, i32, i32) {
    %c0_i32 = arith.constant 0 : i32
    %c0_i32_0 = arith.constant 0 : i32
    %c0_i32_1 = arith.constant 0 : i32
    return %arg0, %c0_i32, %c0_i32_0 : i32, i32, i32
  }
  func.func @transform_1(%arg0: i32, %arg1: i32) -> (i32, i32, i32) {
    %c0_i32 = arith.constant 0 : i32
    %c0_i32_0 = arith.constant 0 : i32
    %c0_i32_1 = arith.constant 0 : i32
    return %arg0, %c0_i32, %c0_i32_0 : i32, i32, i32
  }
  func.func @transform_2(%arg0: i32, %arg1: i32) -> (i32, i32, i32) {
    %c0_i32 = arith.constant 0 : i32
    %c0_i32_0 = arith.constant 0 : i32
    return %arg0, %arg1, %c0_i32 : i32, i32, i32
  }
  func.func @transform_3(%arg0: i32, %arg1: i32) -> (i32, i32, i32) {
    %c0_i32 = arith.constant 0 : i32
    %c0_i32_0 = arith.constant 0 : i32
    return %arg0, %arg1, %c0_i32 : i32, i32, i32
  }
  func.func @transform_4(%arg0: i32, %arg1: i32) -> (i32, i32) {
    %c0_i32 = arith.constant 0 : i32
    %c0_i32_0 = arith.constant 0 : i32
    %c0_i32_1 = arith.constant 0 : i32
    return %c0_i32, %c0_i32_0 : i32, i32
  }
  func.func @transform_5(%arg0: i32, %arg1: i32) -> (i32, i32) {
    %c0_i32 = arith.constant 0 : i32
    %c0_i32_0 = arith.constant 0 : i32
    %c0_i32_1 = arith.constant 0 : i32
    return %c0_i32, %c0_i32_0 : i32, i32
  }
  func.func @transform_6(%arg0: i32, %arg1: i32) -> (i32, i32) {
    %c0_i32 = arith.constant 0 : i32
    %c0_i32_0 = arith.constant 0 : i32
    %c0_i32_1 = arith.constant 0 : i32
    return %c0_i32, %c0_i32_0 : i32, i32
  }
  func.func @transform_7(%arg0: i32, %arg1: i32) -> (i32, i32) {
    %c0_i32 = arith.constant 0 : i32
    %c0_i32_0 = arith.constant 0 : i32
    %c0_i32_1 = arith.constant 0 : i32
    return %c0_i32, %c0_i32_0 : i32, i32
  }
  func.func @transform_8(%arg0: i32, %arg1: i32) -> (i32, i32) {
    %c0_i32 = arith.constant 0 : i32
    %c0_i32_0 = arith.constant 0 : i32
    %c0_i32_1 = arith.constant 0 : i32
    return %c0_i32, %c0_i32_0 : i32, i32
  }
  func.func @transform_9(%arg0: i32, %arg1: i32) -> (i32, i32) {
    %c0_i32 = arith.constant 0 : i32
    %c0_i32_0 = arith.constant 0 : i32
    %c0_i32_1 = arith.constant 0 : i32
    return %c0_i32, %c0_i32_0 : i32, i32
  }
  func.func @transform_10(%arg0: i32, %arg1: i32) -> (i32, i32) {
    %c0_i32 = arith.constant 0 : i32
    %c0_i32_0 = arith.constant 0 : i32
    %c0_i32_1 = arith.constant 0 : i32
    return %c0_i32, %c0_i32_0 : i32, i32
  }
  func.func @transform_11(%arg0: i32, %arg1: i32) -> (i32, i32) {
    %c0_i32 = arith.constant 0 : i32
    %c0_i32_0 = arith.constant 0 : i32
    %c0_i32_1 = arith.constant 0 : i32
    return %c0_i32, %c0_i32_0 : i32, i32
  }
  func.func @transform_12(%arg0: i32, %arg1: i32) -> (i32, i32) {
    %c0_i32 = arith.constant 0 : i32
    %c0_i32_0 = arith.constant 0 : i32
    %c0_i32_1 = arith.constant 0 : i32
    return %c0_i32, %c0_i32_0 : i32, i32
  }
  func.func @transform_13(%arg0: i32, %arg1: i32) -> (i32, i32) {
    %c0_i32 = arith.constant 0 : i32
    %c0_i32_0 = arith.constant 0 : i32
    %c0_i32_1 = arith.constant 0 : i32
    return %c0_i32, %c0_i32_0 : i32, i32
  }
  func.func @transform_14(%arg0: i32, %arg1: i32) -> (i32, i32, i32) {
    %c0_i32 = arith.constant 0 : i32
    %c0_i32_0 = arith.constant 0 : i32
    %c0_i32_1 = arith.constant 0 : i32
    return %arg0, %c0_i32, %c0_i32_0 : i32, i32, i32
  }
}

</mosaic_0001>

<bundles_post_ra>
// kernel: tpu_custom_call.1
= control target key start
LH: loop header
LB: loop body
LE: loop exit
PB: predicated region body
PF: predicated region fallthrough
CT: control target
= control target key end

     0   :  { %s3659_s0 = inlined_call_operand.hbm [shape: f32[2,8,32], index: 0, kind: input, shape index: {}]   ;;  %s3660_s1 = inlined_call_operand.hbm [shape: f32[2,8,32], index: 1, kind: input, shape index: {}]   ;;  %s3661_s2 = inlined_call_operand.hbm [shape: f32[2,16,32], index: 2, kind: input, shape index: {}]   ;;  %s3662_s3 = inlined_call_operand.hbm [shape: f32[2,16,32], index: 3, kind: input, shape index: {}]   ;;  %s3663_s4 = inlined_call_operand.hbm [shape: f32[32,32], index: 4, kind: input, shape index: {}]   ;;  %s3664_s5 = inlined_call_operand.hbm [shape: f32[32,32], index: 5, kind: input, shape index: {}]   ;;  %s3665_s6 = inlined_call_operand.hbm [shape: f32[32,32], index: 6, kind: input, shape index: {}]   ;;  %s3666_s7 = inlined_call_operand.hbm [shape: f32[32,32], index: 7, kind: input, shape index: {}]   ;;  %s3667_s8 = inlined_call_operand.vmem [shape: f32[1,32], index: 8, kind: input, shape index: {}]   ;;  %s3668_s9 = inlined_call_operand.vmem [shape: f32[1,32], index: 9, kind: input, shape index: {}]   ;;  %s3669_s10 = inlined_call_operand.vmem [shape: f32[1,32], index: 10, kind: input, shape index: {}]   ;;  %s3670_s11 = inlined_call_operand.vmem [shape: f32[1,32], index: 11, kind: input, shape index: {}]   ;;  %s3671_s12 = inlined_call_operand.vmem [shape: f32[1,32], index: 12, kind: input, shape index: {}]   ;;  %s3672_s13 = inlined_call_operand.vmem [shape: f32[1,32], index: 13, kind: input, shape index: {}]   ;;  %s3673_s14 = inlined_call_operand.hbm [shape: f32[2,8,32], index: 14, kind: output, shape index: {}]  }
   0x1   :  { %3690 = sst [smem:[#allocation35_spill]] %s3660_s1 }
   0x2   :  { %3691 = sst [smem:[#allocation36_spill]] %s3663_s4 }
   0x3   :  { %3692 = sst [smem:[#allocation37_spill]] %s3664_s5 }
   0x4   :  { %3693 = sst [smem:[#allocation38_spill]] %s3665_s6 }
   0x5   :  { %3694 = sst [smem:[#allocation39_spill]] %s3667_s8 }
   0x6   :  { %3695 = sst [smem:[#allocation40_spill]] %s3668_s9 }
   0x7   :  { %3696 = sst [smem:[#allocation41_spill]] %s3669_s10 }
   0x8   :  { %3697 = sst [smem:[#allocation42_spill]] %s3670_s11 }
   0x9   :  { %3698 = sst [smem:[#allocation43_spill]] %s3671_s12 }
   0xa   :  { %3699 = sst [smem:[#allocation44_spill]] %s3672_s13 }
   0xb   :  { %3700 = sst [smem:[#allocation45_spill]] %s3673_s14 }
   0xc   :  { %19 = vsyncpa [#allocation7], 0 }
   0xd   :  { %21 = vsyncpa [#allocation7 + $0x1], 0 }
   0xe   :  { %22 = vsyncpa [#allocation10], 0 }
   0xf   :  { %24 = vsyncpa [#allocation10 + $0x1], 0 }
  0x10   :  { %25 = vsyncpa [#allocation13], 0 }
  0x11   :  { %27 = vsyncpa [#allocation13 + $0x1], 0 }
  0x12   :  { %28 = vsyncpa [#allocation16], 0 }
  0x13   :  { %29 = vsyncpa [#allocation19], 0 }
  0x14   :  { %30 = vsyncpa [#allocation8], 0 }
  0x15   :  { %32 = vsyncpa [#allocation8 + $0x1], 0  ;;  %s3130_s29 = smov 0   ;;  %s3132_s30 = smov 0  }
  0x16   :  { %s3134_s15 = smov 0   ;;  %s3136_s16 = smov 0  }
  0x17   :  { %s3138_s17 = smov 0   ;;  %s3140_s18 = smov 0  }
  0x18 LB: > { %3701 = sst [smem:[#allocation28_spill]] %s3015_s29  ;;  %s3161_s19 = sadd.s32 4294967295, %s3035_s18   ;;  %s3035_s18 = sphi %s3140_s18, %s38_s18   ;;  %s3031_s17 = sphi %s3138_s17, %s3752_s17   ;;  %s3027_s16 = sphi %s3136_s16, %s3751_s16   ;;  %s3023_s15 = sphi %s3134_s15, %s3747_s15   ;;  %s3019_s30 = sphi %s3132_s30, %s3750_s30   ;;  %s3015_s29 = sphi %s3130_s29, %s3749_s29  }
  0x19   : > { %3702 = sst [smem:[#allocation29_spill]] %s3023_s15  ;;  %s2342_s20 = sadd.s32 4294967294, %s3035_s18  }
  0x1a   : > { %3703 = sst [smem:[#allocation30_spill]] %s3027_s16  ;;  %p70_p0 = scmp.ne.s32.totalorder %s3019_s30, %s3015_s29 }
  0x1b   : > { %p3677_p1 = scmp.eq.s32.totalorder %s3161_s19, 0  ;;  %p386_p2 = scmp.eq.s32.totalorder %s3161_s19, 1 }
  0x1c   : > { %p392_p3 = scmp.eq.s32.totalorder %s2342_s20, 1  ;;  %p2343_p5 = scmp.ge.s32.totalorder %s3035_s18, 1 }
  0x1d   : > { %p3170_p4 = por %p3677_p1, %p70_p0  ;;  %p399_p7 = scmp.lt.s32.totalorder %s3035_s18, 3 }
  0x1e   : > { %p3175_p6 = por %p392_p3, %p70_p0  ;;  %s3037_s24 = smov [#allocation14]  }
  0x1f   : > { %p3180_p8 = pnand %p2343_p5, %p399_p7  ;;  %s411_s25 = sshll.u32 %s3037_s24, 4  ;;  %s412_s25 = int_to_ptr.vmem [resolvable:$true] %s411_s25 }
  0x20   : > { %s3705_s22 = scalar_select %p3175_p6, 1, 0 }
  0x21   : > { %p2590_p9 = pneg %p3180_p8  ;;  %s3038_s27 = smov [#allocation15]  }
  0x22   : > { %3706 = sst [smem:[#allocation31_spill]] %s3705_s22  ;;  %s424_s28 = sshll.u32 %s3038_s27, 4  ;;  %s425_s28 = int_to_ptr.vmem [resolvable:$true] %s424_s28 }
  0x23   : > { %p3189_p11 = pnand %p2590_p9, %p3677_p1  ;;  %s2730_s20 = scalar_lea.vmem %s412_s25, 512 }
  0x24   : > { %p2731_p13 = scmp.ne.s32.totalorder %s412_s25, %s2730_s20  ;;  %p2738_p5 = scmp.lt.s32.totalorder %s412_s25, %s412_s25 }
  0x25   : > { %p3685_p12 = pneg %p3189_p11  ;;  %p2739_p7 = scmp.lt.s32.totalorder %s2730_s20, %s2730_s20 }
  0x27   : > { %p2733_p0 = pnand %p2731_p13, %p3685_p12  ;;  %p2740_p10 = por %p2739_p7, %p2738_p5 }
  0x29   : > { %p2734_p3 = pneg %p2733_p0 }
  0x2b   : > { %p2741_p9 = pnand %p2740_p10, %p2734_p3 }
  0x2d   : > { %2744 = shalt.err (!%p2741_p9)
}
  0x2e   : > { %s3678_s24 = smov 128   ;;  %s3680_s22 = smov 8  }
  0x2f   : > { %s3709_s4 = sld [smem:[#allocation36_spill]]  ;;  %s2756_s14 = scalar_lea.vmem %s425_s28, 512 }
  0x30   : > { %p2757_p13 = scmp.ne.s32.totalorder %s425_s28, %s2756_s14  ;;  %p2764_p10 = scmp.lt.s32.totalorder %s425_s28, %s425_s28 }
  0x31   : > { %p2765_p3 = scmp.lt.s32.totalorder %s2756_s14, %s2756_s14 }
  0x32   : > { %p2759_p0 = pnand %p2757_p13, %p3685_p12 }
  0x33   : > { %p2766_p7 = por %p2765_p3, %p2764_p10 }
  0x34   : > { %p2760_p5 = pneg %p2759_p0 }
  0x35   : > { %2593 = dma.hbm_to_vmem [thread:$0]  (!%p3189_p11), %s3709_s4, 512, %s412_s25, [#allocation13], %s3678_s24, %s3678_s24, %s3680_s22  }
  0x36   : > { %p2767_p9 = pnand %p2766_p7, %p2760_p5 }
  0x38   : > { %2770 = shalt.err (!%p2767_p9)
}
  0x39   : > { %s3710_s5 = sld [smem:[#allocation37_spill]]  ;;  %s50_s14 = sadd.s32 1, %s3031_s17 }
  0x3a   : > { %s57_s29 = sadd.s32 1, %s3023_s15  ;;  %p52_p13 = scmp.ge.s32.totalorder %s50_s14, 2 }
  0x3b   : > { %p64_p0 = scmp.ne.s32.totalorder %s3023_s15, %s3019_s30  ;;  %p65_p5 = scmp.eq.s32.totalorder %s3035_s18, 0 }
  0x3c   : > { %p2624_p10 = scmp.lt.s32.totalorder %s3035_s18, 2  ;;  %s3754_s14 = smov (%p52_p13, %s50_s14), 0 }
  0x3d   : > { %3711 = sst [smem:[#allocation32_spill]] %s3754_s14  ;;  %p66_p3 = por %p65_p5, %p64_p0 }
  0x3e   : > { %p3227_p7 = por %p386_p2, %p64_p0  ;;  %s54_s25 = ssub.s32 %s3031_s17, %s3754_s14 }
  0x3f   : > { %2596 = dma.hbm_to_vmem [thread:$0]  (!%p3189_p11), %s3710_s5, 512, %s425_s28, [#allocation16], %s3678_s24, %s3678_s24, %s3680_s22  }
  0x40   : > { %s3712_s13 = scalar_select %p3227_p7, 1, 0 }
  0x41   : > { %s3234_s28 = sand.u32 1, %s3023_s15   ;;  %p55_p9 = scmp.eq.s32.totalorder %s54_s25, 0 }
  0x42   : > { %3713 = sst [smem:[#allocation33_spill]] %s3712_s13  ;;  %s3687_s27 = sshll.u32 %s3234_s28, 3 }
  0x43   : > { %s2350_s20 = sshll.u32 %s3031_s17, 7  ;;  %p3238_p1 = pnand %p2624_p10, %p66_p3 }
  0x44   : > { %s3243_s22 = scalar_select %p55_p9, %s3023_s15, %s57_s29  }
  0x45   : > { %s3686_s4 = sand.u32 1, %s3035_s18   ;;  %s3716_s1 = sld [smem:[#allocation35_spill]] }
  0x46   : > { %3715 = sst [smem:[#allocation34_spill]] %s3243_s22  ;;  %s504_s13 = scalar_lea.vmem [#allocation9], %s3687_s27 }
  0x47   : > { %s511_s16 = sshll.u32 %s504_s13, 4  ;;  %s2353_s25 = sshll.u32 %s3234_s28, 4  ;;  %s512_s16 = int_to_ptr.vmem [resolvable:$true] %s511_s16 }
  0x48   : > { %s3256_s11 = scalar_lea.sflag [#allocation10], %s3686_s4  ;;  %p3688_p2 = pneg %p3238_p1 }
  0x49   : > { %s2784_s10 = scalar_lea.vmem %s512_s16, 128  ;;  %s3041_s29 = smov [#allocation9]  }
  0x4a   : > { %p2785_p13 = scmp.ne.s32.totalorder %s512_s16, %s2784_s10  ;;  %s2789_s22 = sshll.u32 %s3041_s29, 4  ;;  %s2790_s22 = int_to_ptr.vmem [resolvable:$false] %s2789_s22 }
  0x4b   : > { %s509_s12 = scalar_lea.hbm %s3716_s1, %s2350_s20  ;;  %s2791_s5 = scalar_lea.vmem %s2790_s22, 256 }
  0x4c   : > { %p2787_p0 = pnand %p2785_p13, %p3688_p2  ;;  %p2792_p10 = scmp.lt.s32.totalorder %s512_s16, %s2790_s22 }
  0x4d   : > { %p2793_p3 = scmp.lt.s32.totalorder %s2791_s5, %s2784_s10 }
  0x4e   : > { %p2788_p5 = pneg %p2787_p0 }
  0x4f   : > { %p2794_p9 = por %p2793_p3, %p2792_p10 }
  0x51   : > { %p2795_p12 = pnand %p2794_p9, %p2788_p5 }
  0x53   : > { %2798 = shalt.err (!%p2795_p12)
}
  0x54   : > { %2609 = dma.hbm_to_vmem [thread:$0]  (!%p3238_p1), %s509_s12, 128, %s512_s16, %s3256_s11  }
  0x55   : > { %s522_s13 = scalar_lea.vmem [#allocation11], %s2353_s25  ;;  %s545_s27 = scalar_lea.vmem [#allocation12], %s2353_s25 }
  0x56   : > { %s531_s4 = sshll.u32 %s522_s13, 4  ;;  %s554_s29 = sshll.u32 %s545_s27, 4  ;;  %s3267_s4 = int_to_ptr.vmem [resolvable:$true] %s531_s4  ;;  %s3269_s29 = int_to_ptr.vmem [resolvable:$true] %s554_s29 }
  0x57   : > { %s3042_s22 = smov [#allocation17]   ;;  %p3717_p13 = pneg %p3189_p11 }
  0x58   : > { %s437_s10 = sshll.u32 %s3042_s22, 4  ;;  %s438_s10 = int_to_ptr.vmem [resolvable:$true] %s437_s10 }
  0x59   : > { %s2810_s5 = scalar_lea.vmem %s438_s10, 512  ;;  %p2818_p10 = scmp.lt.s32.totalorder %s438_s10, %s438_s10 }
  0x5a   : > { %p2811_p12 = scmp.ne.s32.totalorder %s438_s10, %s2810_s5  ;;  %p2819_p3 = scmp.lt.s32.totalorder %s2810_s5, %s2810_s5 }
  0x5c   : > { %p2813_p0 = pnand %p2811_p12, %p3717_p13  ;;  %p2820_p9 = por %p2819_p3, %p2818_p10 }
  0x5e   : > { %p2814_p5 = pneg %p2813_p0 }
  0x60   : > { %p2821_p2 = pnand %p2820_p9, %p2814_p5 }
  0x62   : > { %2824 = shalt.err (!%p2821_p2)
}
  0x63   : > { %s3718_s12 = smov 8   ;;  %s3719_s16 = smov 128  }
  0x64   : > { %s3720_s6 = sld [smem:[#allocation38_spill]]  ;;  %s3043_s13 = smov [#allocation18]  }
  0x65   : > { %s450_s22 = sshll.u32 %s3043_s13, 4  ;;  %s451_s22 = int_to_ptr.vmem [resolvable:$true] %s450_s22 }
  0x66   : > { %s2836_s14 = scalar_lea.vmem %s451_s22, 512  ;;  %p2844_p2 = scmp.lt.s32.totalorder %s451_s22, %s451_s22 }
  0x67   : > { %p2837_p12 = scmp.ne.s32.totalorder %s451_s22, %s2836_s14  ;;  %p2845_p10 = scmp.lt.s32.totalorder %s2836_s14, %s2836_s14 }
  0x69   : > { %p2839_p0 = pnand %p2837_p12, %p3717_p13  ;;  %p2846_p3 = por %p2845_p10, %p2844_p2 }
  0x6a   : > { %2599 = dma.hbm_to_vmem [thread:$0]  (!%p3189_p11), %s3720_s6, 512, %s438_s10, [#allocation16], %s3719_s16, %s3719_s16, %s3718_s12  }
  0x6b   : > { %p2840_p5 = pneg %p2839_p0 }
  0x6d   : > { %p2847_p9 = pnand %p2846_p3, %p2840_p5 }
  0x6f   : > { %2850 = shalt.err (!%p2847_p9)
}
  0x70   : > { %2602 = dma.hbm_to_vmem [thread:$0]  (!%p3189_p11), %s3666_s7, 512, %s451_s22, [#allocation19], %s3719_s16, %s3719_s16, %s3718_s12  }
  0x71   : > { %s491_s25 = scalar_lea.hbm %s3659_s0, %s2350_s20  ;;  %s3721_s13 = sshll.u32 %s3234_s28, 3 }
  0x72   : > { %s486_s1 = scalar_lea.vmem [#allocation6], %s3721_s13  ;;  %s3722_s6 = sshll.u32 %s3031_s17, 8 }
  0x73   : > { %s493_s26 = sshll.u32 %s486_s1, 4  ;;  %s3305_s10 = scalar_lea.hbm %s3661_s2, %s3722_s6  ;;  %s494_s26 = int_to_ptr.vmem [resolvable:$true] %s493_s26 }
  0x74   : > { %s483_s5 = scalar_lea.sflag [#allocation7], %s3234_s28  ;;  %s2864_s8 = scalar_lea.vmem %s494_s26, 128 }
  0x75   : > { %p2865_p12 = scmp.ne.s32.totalorder %s494_s26, %s2864_s8  ;;  %p3723_p11 = pneg %p3238_p1 }
  0x76   : > { %s3044_s22 = smov [#allocation6]  }
  0x77   : > { %p2867_p13 = pnand %p2865_p12, %p3723_p11  ;;  %s2869_s27 = sshll.u32 %s3044_s22, 4  ;;  %s2870_s27 = int_to_ptr.vmem [resolvable:$false] %s2869_s27 }
  0x78   : > { %s2871_s20 = scalar_lea.vmem %s2870_s27, 256  ;;  %p2872_p5 = scmp.lt.s32.totalorder %s494_s26, %s2870_s27 }
  0x79   : > { %p2868_p0 = pneg %p2867_p13  ;;  %p2873_p2 = scmp.lt.s32.totalorder %s2871_s20, %s2864_s8 }
  0x7b   : > { %p2874_p10 = por %p2873_p2, %p2872_p5 }
  0x7d   : > { %p2875_p3 = pnand %p2874_p10, %p2868_p0 }
  0x7f   : > { %2878 = shalt.err (!%p2875_p3)
}
  0x80   : > { %2606 = dma.hbm_to_vmem [thread:$0]  (!%p3238_p1), %s491_s25, 128, %s494_s26, %s483_s5  }
  0x81   : > { %s2892_s1 = scalar_lea.vmem %s3267_s4, 256  ;;  %p3724_p12 = pmov %p3723_p11 }
  0x82   : > { %p2893_p9 = scmp.ne.s32.totalorder %s3267_s4, %s2892_s1  ;;  %s3045_s6 = smov [#allocation11]  }
  0x83   : > { %s2897_s9 = sshll.u32 %s3045_s6, 4  ;;  %s2898_s9 = int_to_ptr.vmem [resolvable:$false] %s2897_s9 }
  0x84   : > { %p2895_p11 = pnand %p2893_p9, %p3724_p12  ;;  %s2899_s8 = scalar_lea.vmem %s2898_s9, 512 }
  0x85   : > { %p2900_p5 = scmp.lt.s32.totalorder %s3267_s4, %s2898_s9  ;;  %p2901_p0 = scmp.lt.s32.totalorder %s2899_s8, %s2892_s1 }
  0x86   : > { %p2896_p13 = pneg %p2895_p11 }
  0x87   : > { %p2902_p2 = por %p2901_p0, %p2900_p5 }
  0x89   : > { %p2903_p10 = pnand %p2902_p2, %p2896_p13 }
  0x8b   : > { %2906 = shalt.err (!%p2903_p10)
}
  0x8c   : > { %2612 = dma.hbm_to_vmem [thread:$0]  (!%p3238_p1), %s3305_s10, 256, %s3267_s4, %s3256_s11, %s3719_s16, %s3719_s16, %s3718_s12  }
  0x8d   : > { %s3725_s15 = sshll.u32 %s3031_s17, 8  ;;  %s3726_s13 = sand.u32 1, %s3035_s18  }
  0x8e   : > { %s553_s25 = scalar_lea.hbm %s3662_s3, %s3725_s15  ;;  %s542_s26 = scalar_lea.sflag [#allocation13], %s3726_s13 }
  0x8f   : > { %s2920_s5 = scalar_lea.vmem %s3269_s29, 256  ;;  %p3727_p9 = pmov %p3724_p12 }
  0x90   : > { %p2921_p3 = scmp.ne.s32.totalorder %s3269_s29, %s2920_s5  ;;  %s3046_s22 = smov [#allocation12]  }
  0x91   : > { %s2925_s27 = sshll.u32 %s3046_s22, 4  ;;  %s2926_s27 = int_to_ptr.vmem [resolvable:$false] %s2925_s27 }
  0x92   : > { %p2923_p12 = pnand %p2921_p3, %p3727_p9  ;;  %s2927_s20 = scalar_lea.vmem %s2926_s27, 512 }
  0x93   : > { %p2928_p13 = scmp.lt.s32.totalorder %s3269_s29, %s2926_s27  ;;  %p2929_p5 = scmp.lt.s32.totalorder %s2927_s20, %s2920_s5 }
  0x94   : > { %p2924_p11 = pneg %p2923_p12 }
  0x95   : > { %p2930_p0 = por %p2929_p5, %p2928_p13 }
  0x97   : > { %p2931_p2 = pnand %p2930_p0, %p2924_p11 }
  0x99   : > { %2934 = shalt.err (!%p2931_p2)
}
  0x9a   : > { %2615 = dma.hbm_to_vmem [thread:$0]  (!%p3238_p1), %s553_s25, 256, %s3269_s29, %s542_s26, %s3719_s16, %s3719_s16, %s3718_s12  }
  0x9b   : > { %566 = sbr.rel (%p3180_p8) target bundleno = 2763 (0xacb), region = 76  ;;  %s3349_s4 = sand.u32 (!%p3180_p8), 1, %s3019_s30  }
  0x9c   : > { %s3352_s11 = sshll.u32 (!%p3180_p8), %s3349_s4, 3  ;;  %s569_s10 = scalar_lea.sflag (!%p3180_p8), [#allocation7], %s3349_s4 }
  0x9d   : > { %s572_s1 = scalar_lea.vmem (!%p3180_p8), [#allocation6], %s3352_s11 }
  0xa0   : > { %2986 = dma.done.wait (%p3170_p4), %s569_s10, 128  }
  0xa1   : > { %2988 = vsyncadd (%p3170_p4), %s569_s10, 4294967168  ;;  %s577_s23 = sand.u32 1, %s3161_s19   ;;  %s581_s29 = scalar_lea.vmem [#allocation9], %s3352_s11 }
  0xa2   : > { %s578_s24 = scalar_lea.sflag [#allocation10], %s577_s23 }
  0xa3   : > { %2990 = dma.done.wait (%p3170_p4), %s578_s24, 384  }
  0xa4   : > { %2992 = vsyncadd (%p3170_p4), %s578_s24, 4294966912  ;;  %s2362_s12 = sshll.u32 %s3349_s4, 4  ;;  %s596_s6 = scalar_lea.sflag [#allocation13], %s577_s23 }
  0xa5   : > { %s3367_s16 = scalar_lea.vmem [#allocation11], %s2362_s12  ;;  %s3369_s9 = scalar_lea.vmem [#allocation12], %s2362_s12 }
  0xa6   : > { %2994 = dma.done.wait (%p3170_p4), %s596_s6, 256  }
  0xa7   : > { %2996 = vsyncadd (%p3170_p4), %s596_s6, 4294967040  ;;  %p3728_p1 = scmp.eq.s32.totalorder %s3161_s19, 0 }
  0xa9   : > { %2998 = dma.done.wait (%p3728_p1), [#allocation13], 512   ;;  %p3729_p8 = pmov %p3728_p1 }
  0xaa   : > { %p3730_p10 = pmov %p3728_p1 }
  0xab   : > { %3000 = vsyncadd (%p3729_p8), [#allocation13], 4294966784 }
  0xac   : > { %3002 = dma.done.wait (%p3730_p10), [#allocation16], 1024   ;;  %p3731_p3 = pmov %p3728_p1 }
  0xad   : > { %p3732_p9 = pmov %p3728_p1 }
  0xae   : > { %3004 = vsyncadd (%p3731_p3), [#allocation16], 4294966272 }
  0xaf   : > { %3006 = dma.done.wait (%p3732_p9), [#allocation19], 512   ;;  %p3733_p12 = pmov %p3728_p1 }
  0xb0   : > { %v3047_v0 = vmov 0.0   ;;  %vm3048_vm0 = vmmov 0   ;;  %v687_v1 = vld [vmem:[#allocation14 + $0x18] sm:$0xff]  ;;  %v686_v3 = vld [vmem:[#allocation14 + $0x10] sm:$0xff]  ;;  %v685_v5 = vld [vmem:[#allocation14 + $0x8] sm:$0xff]  ;;  %vm695_vm1 = vcmask 261120  }
  0xb1   : > { %3008 = vsyncadd (%p3733_p12), [#allocation19], 4294966784  ;;  %2455 = vmatprep.subr.mxu0 %v3047_v0  ;;  %2463 = vmatprep.mubr.msk.f32.mxu0 %vm3048_vm0, %v3047_v0  ;;  %v793_v2 = vld [vmem:[#allocation15 + $0x18] sm:$0xff]  ;;  %v792_v4 = vld [vmem:[#allocation15 + $0x10] sm:$0xff]  ;;  %vm779_vm2 = vcmask 64512   ;;  %s3734_s8 = sld [smem:[#allocation39_spill]] }
  0xb2   : > { %2456 = vmatpush3.msra.mxu0 %v687_v1  ;;  %2466 = vmatprep.subr.mxu1 %v793_v2  ;;  %v791_v6 = vld [vmem:[#allocation15 + $0x8] sm:$0xff]  ;;  %v684_v7 = vld [vmem:[#allocation14] sm:$0xff]  ;;  %v682_v9 = vld [vmem:[%s581_s29] sm:$0xff]  ;;  %780 = vst.msk [vmem:[#allocation5] sm:$0xff] %vm779_vm2, %v3047_v0  ;;  %s3735_s14 = sld [smem:[#allocation40_spill]]  ;;  %s3049_s25 = smov 120  }
  0xb3   : > { %2457 = vmatprep.subr.mxu0 %v3047_v0  ;;  %2467 = vmatpush3.msra.mxu1 %v793_v2  ;;  %v3393_v8 = vld [vmem:[%s572_s1] sm:$0xff]  ;;  %v785_v14 = vld [vmem:[%s3367_s16 + $0x8] sm:$0xff]  ;;  %781 = vst.msk [vmem:[#allocation5 + $0x8] sm:$0xff] %vm779_vm2, %v3047_v0  ;;  %782 = vst.msk [vmem:[#allocation5 + $0x10] sm:$0xff] %vm779_vm2, %v3047_v0  ;;  %vm770_vm3 = vcmask 7168   ;;  %vm1058_vm4 = vcmask 130048  }
  0xb4   : > { %2458 = vmatpush3.msra.mxu0 %v686_v3  ;;  %2468 = vmatprep.subr.mxu1 %v792_v4  ;;  %v784_v10 = vld [vmem:[%s3367_s16] sm:$0xff]  ;;  %v683_v13 = vadd.f32 %v682_v9, %v3393_v8  ;;  %v787_v15 = vld [vmem:[%s3369_s9 + $0x8] sm:$0xff]  ;;  %783 = vst.msk [vmem:[#allocation5 + $0x18] sm:$0xff] %vm779_vm2, %v3047_v0  ;;  %v3050_v35 = vmov -1e+30   ;;  %v3051_v40 = vmov 0  }
  0xb5   : > { %v786_v11 = vld [vmem:[%s3369_s9] sm:$0xff]  ;;  %2459 = vmatprep.subr.mxu0 %v3047_v0  ;;  %2469 = vmatpush3.msra.mxu1 %v792_v4  ;;  %v789_v17 = vadd.f32 %v787_v15, %v785_v14  ;;  %v886_v28 = vld [vmem:[#allocation17 + $0x18] sm:$0xff]  ;;  %v884_v30 = vld [vmem:[#allocation17 + $0x8] sm:$0xff]  ;;  %771 = vst.msk [vmem:[#allocation3] sm:$0xff] %vm770_vm3, %v3050_v35  ;;  %s3736_s5 = sld [smem:[#allocation41_spill]]  ;;  %s3052_s22 = smov 112  }
  0xb6   : > { %v790_v12 = vld [vmem:[#allocation15] sm:$0xff]  ;;  %2460 = vmatpush3.msra.mxu0 %v685_v5  ;;  %2470 = vmatprep.subr.mxu1 %v791_v6  ;;  %v788_v16 = vadd.f32 %v786_v11, %v784_v10  ;;  %v885_v29 = vld [vmem:[#allocation17 + $0x10] sm:$0xff]  ;;  %772 = vst.msk [vmem:[#allocation3 + $0x8] sm:$0xff] %vm770_vm3, %v3050_v35  ;;  %773 = vst.msk [vmem:[#allocation3 + $0x10] sm:$0xff] %vm770_vm3, %v3050_v35  ;;  %s3053_s27 = smov 104   ;;  %s3737_s1 = sld [smem:[#allocation42_spill]] }
  0xb7   : > { %2461 = vmatprep.subr.mxu0 %v3047_v0  ;;  %2471 = vmatpush3.msra.mxu1 %v791_v6  ;;  %v2369_v18 = vld [vmem:[%s3734_s8] ss:$0 sm:$0xff]  ;;  %v883_v31 = vld [vmem:[#allocation17] sm:$0xff]  ;;  %774 = vst.msk [vmem:[#allocation3 + $0x18] sm:$0xff] %vm770_vm3, %v3050_v35  ;;  %775 = vst.msk [vmem:[#allocation4] sm:$0xff] %vm770_vm3, %v3047_v0  ;;  %s3738_s23 = sld [smem:[#allocation30_spill]] }
  0xb8   : > { %2462 = vmatpush3.msra.mxu0 %v684_v7  ;;  %2472 = vmatprep.subr.mxu1 %v790_v12  ;;  %v2371_v20 = vld [vmem:[%s3735_s14] ss:$0 sm:$0xff]  ;;  %776 = vst.msk [vmem:[#allocation4 + $0x8] sm:$0xff] %vm770_vm3, %v3047_v0  ;;  %777 = vst.msk [vmem:[#allocation4 + $0x10] sm:$0xff] %vm770_vm3, %v3047_v0  ;;  %s3740_s16 = sld [smem:[#allocation43_spill]]  ;;  %s674_s8 = scalar_lea.vmem [#allocation20], %s3352_s11 }
  0xb9   : > { %2464 = vmatmul.mubr.msk.f32.vlgmr.msra.gmra.mxu0 %vm695_vm1, %v683_v13  ;;  %2473 = vmatpush3.msra.mxu1 %v790_v12  ;;  %778 = vst.msk [vmem:[#allocation4 + $0x18] sm:$0xff] %vm770_vm3, %v3047_v0  ;;  %s3741_s19 = sld [smem:[#allocation44_spill]]  ;;  %s2153_s15 = sshll.u32 %s674_s8, 4  ;;  %s2154_s15 = int_to_ptr.vmem [resolvable:$true] %s2153_s15 }
  0xba   : > { %2474 = vmatprep.mubr.msk.f32.mxu1 %vm695_vm1, %v788_v16  ;;  %2488 = vmatprep.subr.mxu1 %v3047_v0  ;;  %s2140_s26 = scalar_lea.sflag [#allocation8], %s3349_s4 }
  0xbb   : > { %2475 = vmatmul.mubr.msk.f32.vlgmr.msra.gmra.mxu1 %vm695_vm1, %v789_v17  ;;  %2485 = vmatprep.mubr.msk.f32.mxu0 %vm695_vm1, %v784_v10  ;;  %v2374_v46 = vld [vmem:[%s3736_s5] ss:$0 sm:$0xff]  ;;  %s2935_s5 = scalar_lea.vmem %s2154_s15, 128 }
  0xbc   : > { %2492 = vmatprep.mubr.msk.f32.mxu1 %vm3048_vm0, %v3047_v0  ;;  %2477 = vmatprep.subr.mxu0 %v886_v28  ;;  %v3483_v50 = vld [vmem:[#allocation3] sm:$0xff]  ;;  %p2936_p4 = scmp.ne.s32.totalorder %s2154_s15, %s2935_s5 }
  0xbd   : > { %2478 = vmatpush3.msra.mxu0 %v886_v28  ;;  %2691 = vset.pattern.permute.xlu0 %v3051_v40  ;;  %v3494_v54 = vld [vmem:[#allocation3 + $0x8] sm:$0xff]  ;;  %v1449_v17 = vld [vmem:[#allocation3 + $0x10] sm:$0xff]  ;;  %s2401_s21 = sshll.u32 %s3738_s23, 7 }
  0xbe   : > { %2479 = vmatprep.subr.mxu0 %v885_v29  ;;  %2692 = vset.pattern.permute.xlu1 %v3051_v40  ;;  %v1647_v40 = vld [vmem:[#allocation3 + $0x18] sm:$0xff]  ;;  %p2937_p11 = pnand %p2936_p4, %p3227_p7 }
  0xbf   : > { %2480 = vmatpush3.msra.mxu0 %v885_v29 }
  0xc0   : > { %2481 = vmatprep.subr.mxu0 %v884_v30  ;;  %p2938_p13 = pneg %p2937_p11 }
  0xc1   : > { %2482 = vmatpush3.msra.mxu0 %v884_v30 }
  0xc2   : > { %2483 = vmatprep.subr.mxu0 %v883_v31 }
  0xc3   : > { %2484 = vmatpush3.msra.mxu0 %v883_v31 }
  0xc4   : > { %2486 = vmatmul.mubr.msk.f32.vlgmr.msra.gmra.mxu0 %vm695_vm1, %v785_v14  ;;  %2495 = vmatprep.subr.mxu0 %v3047_v0 }
  0xc5   : > { %2499 = vmatprep.mubr.msk.f32.mxu0 %vm3048_vm0, %v3047_v0 }
 0x179   : > { %v765_v19 = vpop.f32.mrf.mxu0 }
 0x17a   : > { %v766_v21 = vadd.f32 %v2369_v18, %v765_v19 }
 0x17b   : > { %v2476_v22 = vpop.f32.mrf.mxu1  ;;  %v2465_v23 = vpop.f32.mrf.mxu0 }
 0x17c   : > { %769 = vst.msk [vmem:[#allocation2] sm:$0xff] %vm695_vm1, %v766_v21  ;;  %v3426_v24 = vadd.f32 %v2476_v22, %v2371_v20 }
 0x17d   : > { %v874_v25 = vpop.f32.mrf.mxu1 }
 0x17e   : > { %1169 = vrot.lane.b32.xlu0 %v3426_v24, %s3049_s25  ;;  %2489 = vmatpush3.xpose.msk.msra.mxu1 %vm779_vm2, %v3426_v24  ;;  %v3433_v26 = vadd.f32 %v2371_v20, %v874_v25 }
 0x17f   : > { %2490 = vmatprep.subr.mxu1 %v3047_v0 }
 0x182   : > { %1167 = vrot.lane.b32.xlu0 %v3433_v26, %s3049_s25  ;;  %2491 = vmatpush3.xpose.msk.msra.mxu1 %vm779_vm2, %v3433_v26 }
 0x183   : > { %v3439_v27 = vld [vmem:[#allocation2] sm:$0xff]  ;;  %2502 = vmatprep.subr.mxu1 %v3047_v0 }
 0x184   : > { %1165 = vrot.lane.b32.xlu1 %v3439_v27, %s3049_s25  ;;  %v2487_v45 = vpop.f32.mrf.mxu0 }
 0x185   : > { %2493 = vmatmul.mubr.msk.f32.vlgmr.msra.gmra.mxu1 %vm779_vm2, %v3439_v27  ;;  %v3476_v47 = vadd.f32 %v2487_v45, %v2374_v46 }
 0x186   : > { %2506 = vmatprep.mubr.msk.f32.mxu1 %vm3048_vm0, %v3047_v0  ;;  %v966_v48 = vpop.f32.mrf.mxu0 }
 0x187   : > { %2496 = vmatpush3.msra.mxu0 %v3476_v47  ;;  %v3479_v49 = vadd.f32 %v2374_v46, %v966_v48 }
 0x188   : > { %2497 = vmatprep.subr.mxu0 %v3047_v0 }
 0x189   : > { %2498 = vmatpush3.msra.mxu0 %v3479_v49 }
 0x18a   : > { %2509 = vmatprep.subr.mxu0 %v3047_v0 }
 0x1f0   : > { %v1170_v32 = vpop.permute.xlu0 %1169 }
 0x1f1   : > { %2503 = vmatpush3.xpose.msk.msra.mxu1 %vm779_vm2, %v1170_v32 }
 0x1f2   : > { %2504 = vmatprep.subr.mxu1 %v3047_v0 }
 0x1f4   : > { %v1168_v33 = vpop.permute.xlu0 %1167 }
 0x1f5   : > { %2505 = vmatpush3.xpose.msk.msra.mxu1 %vm779_vm2, %v1168_v33 }
 0x1f6   : > { %v1166_v34 = vpop.permute.xlu1 %1165  ;;  %2523 = vmatprep.subr.mxu1 %v3047_v0 }
 0x1f8   : > { %2507 = vmatmul.mubr.msk.f32.vlgmr.msra.gmra.mxu1 %vm779_vm2, %v1166_v34 }
 0x1f9   : > { %2527 = vmatprep.mubr.msk.f32.mxu1 %vm3048_vm0, %v3047_v0 }
 0x245   : > { %v1052_v36 = vpop.f32.mrf.mxu1 }
 0x246   : > { %v1056_v37 = vmul.f32 0.35355338, %v1052_v36 }
 0x247   : > { %v2494_v38 = vpop.f32.mrf.mxu1 }
 0x248   : > { %v1059_v39 = vsel %vm1058_vm4, %v1056_v37, -inf }
 0x249   : > { %1060 = vmax.xlane.f32.xlu1 %v1059_v39 }
 0x2b8   : > { %v1243_v41 = vpop.f32.mrf.mxu1 }
 0x2b9   : > { %v1247_v42 = vmul.f32 0.35355338, %v1243_v41 }
 0x2ba   : > { %v2508_v43 = vpop.f32.mrf.mxu1 }
 0x2bb   : > { %v1250_v44 = vsel %vm1058_vm4, %v1247_v42, -inf  ;;  %v1266_v43 = vld [vmem:[#allocation4 + $0x8] sm:$0xff] }
 0x2bc   : > { %1251 = vmax.xlane.f32.xlu0 %v1250_v44 }
 0x2d2   : > { %v1061_v51 = vpop.xlane.xlu1 %1060 }
 0x2d3   : > { %v3487_v52 = vmax.f32 %v3483_v50, %v1061_v51 }
 0x2d5   : > { %v1063_v53 = vsub.f32 %v3483_v50, %v3487_v52  ;;  %1164 = vst.msk [vmem:[#allocation3] sm:$0xff] %vm770_vm3, %v3487_v52  ;;  %1068 = vperm.xlu0 %2691, %v3487_v52  }
 0x345   : > { %v1252_v55 = vpop.xlane.xlu0 %1251 }
 0x346   : > { %v3497_v56 = vmax.f32 %v3494_v54, %v1252_v55  ;;  %v1466_v55 = vld [vmem:[#allocation4 + $0x10] sm:$0xff] }
 0x348   : > { %v1254_v57 = vsub.f32 %v3494_v54, %v3497_v56  ;;  %1364 = vst.msk [vmem:[#allocation3 + $0x8] sm:$0xff] %vm770_vm3, %v3497_v56  ;;  %1259 = vperm.xlu1 %2692, %v3497_v56  }
 0x34a   : > { %v1255_v38 = vmul.f32 1.442695, %v1254_v57 }
 0x34c   : > { %1285 = vrot.lane.b32.xlu1 %v3476_v47, %s3049_s25 }
 0x350   : > { %v1069_v58 = vpop.permute.xlu0 %1068  ;;  %1283 = vrot.lane.b32.xlu1 %v3479_v49, %s3049_s25  ;;  %s3742_s25 = sld [smem:[#allocation45_spill]] }
 0x351   : > { %v1071_v59 = vsub.f32 %v1056_v37, %v1069_v58 }
 0x353   : > { %v1072_v60 = vmul.f32 1.442695, %v1071_v59 }
 0x354   : > { %1369 = vrot.lane.b32.xlu1 %v3426_v24, %s3052_s22 }
 0x355   : > { %2693 = vpow2.f32 %v1072_v60 }
 0x356   : > { %s2151_s13 = scalar_lea.hbm %s3742_s25, %s2401_s21 }
 0x358   : > { %1367 = vrot.lane.b32.xlu1 %v3433_v26, %s3052_s22 }
 0x35c   : > { %1365 = vrot.lane.b32.xlu1 %v3439_v27, %s3052_s22 }
 0x362   : > { %v3514_v61 = vpop.eup %2693 }
 0x363   : > { %2500 = vmatmul.mubr.msk.f32.vlgmr.msra.gmra.mxu0 %vm1058_vm4, %v3514_v61  ;;  %v1076_v59 = vsel %vm1058_vm4, %v3514_v61, 0.0  ;;  %v1064_v61 = vmul.f32 1.442695, %v1063_v53  ;;  %v1474_v53 = vld [vmem:[#allocation5 + $0x10] sm:$0xff] }
 0x364   : > { %2513 = vmatprep.mubr.msk.f32.mxu0 %vm3048_vm0, %v3047_v0 }
 0x3c3   : > { %v1260_v62 = vpop.permute.xlu1 %1259 }
 0x3c4   : > { %v1262_v63 = vsub.f32 %v1247_v42, %v1260_v62 }
 0x3c6   : > { %v1263_v1 = vmul.f32 1.442695, %v1262_v63 }
 0x3c7   : > { %v1286_v2 = vpop.permute.xlu1 %1285 }
 0x3c8   : > { %2695 = vpow2.f32 %v1263_v1  ;;  %2510 = vmatpush3.msra.mxu0 %v1286_v2 }
 0x3c9   : > { %2511 = vmatprep.subr.mxu0 %v3047_v0 }
 0x3cb   : > { %v1284_v3 = vpop.permute.xlu1 %1283 }
 0x3cc   : > { %2512 = vmatpush3.msra.mxu0 %v1284_v3 }
 0x3cd   : > { %2516 = vmatprep.subr.mxu0 %v3047_v0 }
 0x3cf   : > { %v1370_v4 = vpop.permute.xlu1 %1369 }
 0x3d3   : > { %v1368_v6 = vpop.permute.xlu1 %1367 }
 0x3d5   : > { %v2696_v5 = vpop.eup %2695 }
 0x3d6   : > { %2514 = vmatmul.mubr.msk.f32.vlgmr.msra.gmra.mxu0 %vm1058_vm4, %v2696_v5  ;;  %v1268_v36 = vsel %vm1058_vm4, %v2696_v5, 0.0 }
 0x3d7   : > { %2517 = vmatpush3.xpose.msk.msra.mxu0 %vm779_vm2, %v1370_v4  ;;  %2520 = vmatprep.mubr.msk.f32.mxu0 %vm3048_vm0, %v3047_v0  ;;  %v1366_v7 = vpop.permute.xlu1 %1365 }
 0x3d8   : > { %2518 = vmatprep.subr.mxu0 %v3047_v0 }
 0x3db   : > { %2519 = vmatpush3.xpose.msk.msra.mxu0 %vm779_vm2, %v1368_v6 }
 0x3dc   : > { %2537 = vmatprep.subr.mxu0 %v3047_v0 }
 0x3de   : > { %2521 = vmatmul.mubr.msk.f32.vlgmr.msra.gmra.mxu0 %vm779_vm2, %v1366_v7  ;;  %v1765_v7 = vld [vmem:[#allocation18 + $0x8] sm:$0xff] }
 0x3df   : > { %2541 = vmatprep.mubr.msk.f32.mxu0 %vm3048_vm0, %v3047_v0 }
 0x423   : > { %v3532_v9 = vpop.f32.mrf.mxu0 }
 0x425   : > { %v2501_v10 = vpop.f32.mrf.mxu0 }
 0x496   : > { %v3534_v11 = vpop.f32.mrf.mxu0 }
 0x498   : > { %v2515_v12 = vpop.f32.mrf.mxu0 }
 0x499   : > { %v1074_v12 = vld [vmem:[#allocation4] sm:$0xff] }
 0x49e   : > { %v1443_v13 = vpop.f32.mrf.mxu0 }
 0x49f   : > { %v1447_v14 = vmul.f32 0.35355338, %v1443_v13 }
 0x4a0   : > { %v2522_v15 = vpop.f32.mrf.mxu0 }
 0x4a1   : > { %v1450_v16 = vsel %vm1058_vm4, %v1447_v14, -inf }
 0x4a2   : > { %1451 = vmax.xlane.f32.xlu1 %v1450_v16 }
 0x52b   : > { %v1452_v18 = vpop.xlane.xlu1 %1451 }
 0x52c   : > { %v1453_v19 = vmax.f32 %v1449_v17, %v1452_v18 }
 0x52e   : > { %v1454_v20 = vsub.f32 %v1449_v17, %v1453_v19  ;;  %1562 = vst.msk [vmem:[#allocation3 + $0x10] sm:$0xff] %vm770_vm3, %v1453_v19  ;;  %1459 = vperm.xlu0 %2691, %v1453_v19   ;;  %v1764_v19 = vld [vmem:[#allocation18] sm:$0xff] }
 0x530   : > { %v1455_v39 = vmul.f32 1.442695, %v1454_v20 }
 0x532   : > { %1483 = vrot.lane.b32.xlu0 %v3476_v47, %s3052_s22 }
 0x536   : > { %1481 = vrot.lane.b32.xlu0 %v3479_v49, %s3052_s22  ;;  %s3054_s22 = smov [#allocation20]  }
 0x53a   : > { %1567 = vrot.lane.b32.xlu0 %v3426_v24, %s3053_s27 }
 0x53e   : > { %1565 = vrot.lane.b32.xlu0 %v3433_v26, %s3053_s27 }
 0x542   : > { %1563 = vrot.lane.b32.xlu0 %v3439_v27, %s3053_s27 }
 0x5a9   : > { %v1460_v21 = vpop.permute.xlu0 %1459 }
 0x5aa   : > { %v1462_v22 = vsub.f32 %v1447_v14, %v1460_v21 }
 0x5ac   : > { %v1463_v23 = vmul.f32 1.442695, %v1462_v22  ;;  %v1664_v22 = vld [vmem:[#allocation4 + $0x18] sm:$0xff] }
 0x5ad   : > { %v1484_v25 = vpop.permute.xlu0 %1483 }
 0x5ae   : > { %2697 = vpow2.f32 %v1463_v23  ;;  %2524 = vmatpush3.msra.mxu1 %v1484_v25 }
 0x5af   : > { %2525 = vmatprep.subr.mxu1 %v3047_v0  ;;  %2699 = vpow2.f32 %v1255_v38 }
 0x5b0   : > { %2701 = vpow2.f32 %v1455_v39  ;;  %v1766_v39 = vld [vmem:[#allocation18 + $0x10] sm:$0xff] }
 0x5b1   : > { %v1482_v28 = vpop.permute.xlu0 %1481 }
 0x5b2   : > { %2526 = vmatpush3.msra.mxu1 %v1482_v28 }
 0x5b3   : > { %2530 = vmatprep.subr.mxu1 %v3047_v0 }
 0x5b5   : > { %v1568_v29 = vpop.permute.xlu0 %1567 }
 0x5b9   : > { %v1566_v26 = vpop.permute.xlu0 %1565 }
 0x5bb   : > { %v2698_v24 = vpop.eup %2697 }
 0x5bc   : > { %2528 = vmatmul.mubr.msk.f32.vlgmr.msra.gmra.mxu1 %vm1058_vm4, %v2698_v24  ;;  %v1468_v37 = vsel %vm1058_vm4, %v2698_v24, 0.0  ;;  %v2700_v41 = vpop.eup %2699 }
 0x5bd   : > { %2531 = vmatpush3.xpose.msk.msra.mxu1 %vm779_vm2, %v1568_v29  ;;  %2534 = vmatprep.mubr.msk.f32.mxu1 %vm3048_vm0, %v3047_v0  ;;  %v1564_v27 = vpop.permute.xlu0 %1563  ;;  %v1267_v46 = vmul.f32 %v2700_v41, %v1266_v43  ;;  %v2702_v48 = vpop.eup %2701  ;;  %v1274_v29 = vld [vmem:[#allocation5 + $0x8] sm:$0xff] }
 0x5be   : > { %2532 = vmatprep.subr.mxu1 %v3047_v0  ;;  %v1467_v54 = vmul.f32 %v2702_v48, %v1466_v55 }
 0x5c1   : > { %2533 = vmatpush3.xpose.msk.msra.mxu1 %vm779_vm2, %v1566_v26 }
 0x5c2   : > { %2549 = vmatprep.subr.mxu1 %v3047_v0 }
 0x5c4   : > { %2535 = vmatmul.mubr.msk.f32.vlgmr.msra.gmra.mxu1 %vm779_vm2, %v1564_v27  ;;  %v1082_v27 = vld [vmem:[#allocation5] sm:$0xff] }
 0x5c5   : > { %2551 = vmatprep.mubr.msk.f32.mxu1 %vm3048_vm0, %v3047_v0  ;;  %2550 = vmatpush3.msra.mxu1 %v1764_v19 }
 0x5c6   : > { %2559 = vmatprep.subr.mxu1 %v3047_v0 }
 0x67c   : > { %v3560_v30 = vpop.f32.mrf.mxu1 }
 0x67e   : > { %v2529_v31 = vpop.f32.mrf.mxu1 }
 0x684   : > { %v1641_v32 = vpop.f32.mrf.mxu1 }
 0x685   : > { %v1645_v33 = vmul.f32 0.35355338, %v1641_v32 }
 0x686   : > { %v2536_v34 = vpop.f32.mrf.mxu1 }
 0x687   : > { %v1648_v35 = vsel %vm1058_vm4, %v1645_v33, -inf }
 0x688   : > { %1649 = vmax.xlane.f32.xlu0 %v1648_v35 }
 0x68c   : > { %1269 = vadd.xlane.f32.xlu0 %v1268_v36 }
 0x690   : > { %1469 = vadd.xlane.f32.xlu0 %v1468_v37 }
 0x711   : > { %v1650_v42 = vpop.xlane.xlu0 %1649 }
 0x712   : > { %v1651_v44 = vmax.f32 %v1647_v40, %v1650_v42  ;;  %v1672_v42 = vld [vmem:[#allocation5 + $0x18] sm:$0xff] }
 0x714   : > { %v1652_v45 = vsub.f32 %v1647_v40, %v1651_v44  ;;  %1760 = vst.msk [vmem:[#allocation3 + $0x18] sm:$0xff] %vm770_vm3, %v1651_v44  ;;  %1657 = vperm.xlu1 %2692, %v1651_v44  }
 0x715   : > { %v1270_v51 = vpop.xlane.xlu0 %1269 }
 0x716   : > { %v1271_v58 = vadd.f32 %v1270_v51, %v1267_v46  ;;  %v1653_v3 = vmul.f32 1.442695, %v1652_v45 }
 0x718   : > { %1272 = vst.msk [vmem:[#allocation4 + $0x8] sm:$0xff] %vm770_vm3, %v1271_v58  ;;  %1681 = vrot.lane.b32.xlu1 %v3476_v47, %s3053_s27 }
 0x719   : > { %v1470_v56 = vpop.xlane.xlu0 %1469 }
 0x71a   : > { %v1471_v57 = vadd.f32 %v1470_v56, %v1467_v54 }
 0x71c   : > { %1472 = vst.msk [vmem:[#allocation4 + $0x10] sm:$0xff] %vm770_vm3, %v1471_v57  ;;  %1679 = vrot.lane.b32.xlu1 %v3479_v49, %s3053_s27  ;;  %s2939_s27 = sshll.u32 %s3054_s22, 4  ;;  %s2940_s27 = int_to_ptr.vmem [resolvable:$false] %s2939_s27 }
 0x71d   : > { %s2941_s11 = scalar_lea.vmem %s2940_s27, 256  ;;  %p2942_p5 = scmp.lt.s32.totalorder %s2154_s15, %s2940_s27 }
 0x71e   : > { %p2943_p0 = scmp.lt.s32.totalorder %s2941_s11, %s2935_s5 }
 0x71f   : > { %v1778_v4 = vld [vmem:[#allocation4 + $0x8] sm:$0xff] }
 0x720   : > { %p2944_p2 = por %p2943_p0, %p2942_p5 }
 0x722   : > { %p2945_p1 = pnand %p2944_p2, %p2938_p13 }
 0x723   : > { %v1933_v18 = vld [vmem:[#allocation4 + $0x10] sm:$0xff] }
 0x740   : > { %1077 = vadd.xlane.f32.xlu1 %v1076_v59 }
 0x751   : > { %1477 = vperm.xlu1 %2692, %v2702_v48  }
 0x78f   : > { %v1658_v60 = vpop.permute.xlu1 %1657 }
 0x790   : > { %v1660_v62 = vsub.f32 %v1645_v33, %v1658_v60 }
 0x792   : > { %v1661_v63 = vmul.f32 1.442695, %v1660_v62 }
 0x793   : > { %v1682_v1 = vpop.permute.xlu1 %1681 }
 0x794   : > { %2703 = vpow2.f32 %v1661_v63  ;;  %2538 = vmatpush3.msra.mxu0 %v1682_v1 }
 0x795   : > { %2539 = vmatprep.subr.mxu0 %v3047_v0  ;;  %2705 = vpow2.f32 %v1064_v61 }
 0x796   : > { %2707 = vpow2.f32 %v1653_v3 }
 0x797   : > { %v1680_v47 = vpop.permute.xlu1 %1679  ;;  %2709 = vrcp.f32 %v1778_v4  ;;  %v2397_v4 = vld [vmem:[%s3737_s1] ss:$0 sm:$0xff] }
 0x798   : > { %2540 = vmatpush3.msra.mxu0 %v1680_v47 }
 0x799   : > { %2544 = vmatprep.subr.mxu0 %v3047_v0 }
 0x7a1   : > { %v2704_v2 = vpop.eup %2703 }
 0x7a2   : > { %2542 = vmatmul.mubr.msk.f32.vlgmr.msra.gmra.mxu0 %vm1058_vm4, %v2704_v2  ;;  %v1666_v49 = vsel %vm1058_vm4, %v2704_v2, 0.0  ;;  %v2706_v5 = vpop.eup %2705 }
 0x7a3   : > { %1667 = vadd.xlane.f32.xlu0 %v1666_v49  ;;  %2546 = vmatprep.mubr.msk.f32.mxu0 %vm3048_vm0, %v3047_v0  ;;  %v2708_v6 = vpop.eup %2707  ;;  %v1075_v13 = vmul.f32 %v2706_v5, %v1074_v12 }
 0x7a4   : > { %2545 = vmatpush3.msra.mxu0 %v1765_v7  ;;  %v2710_v10 = vpop.eup %2709  ;;  %v1665_v23 = vmul.f32 %v2708_v6, %v1664_v22 }
 0x7a5   : > { %2554 = vmatprep.subr.mxu0 %v3047_v0 }
 0x7b9   : > { %1277 = vperm.xlu0 %2691, %v2700_v41  }
 0x7bd   : > { %1085 = vperm.xlu0 %2691, %v2706_v5  }
 0x7c1   : > { %1675 = vperm.xlu0 %2691, %v2708_v6  }
 0x7c5   : > { %1782 = vperm.xlu0 %2691, %v2710_v10  }
 0x7c9   : > { %v1078_v50 = vpop.xlane.xlu1 %1077 }
 0x7ca   : > { %v1079_v52 = vadd.f32 %v1078_v50, %v1075_v13 }
 0x7cc   : > { %1081 = vst.msk [vmem:[#allocation4] sm:$0xff] %vm770_vm3, %v1079_v52 }
 0x7cd   : > { %v1478_v14 = vpop.permute.xlu1 %1477 }
 0x7ce   : > { %v1480_v15 = vmul.f32 %v1478_v14, %v1474_v53 }
 0x7d0   : > { %v1560_v16 = vadd.f32 %v3560_v30, %v1480_v15 }
 0x7d2   : > { %1561 = vst.msk [vmem:[#allocation5 + $0x10] sm:$0xff] %vm779_vm2, %v1560_v16  ;;  %v2398_v16 = vld [vmem:[%s3740_s16] ss:$0 sm:$0xff] }
 0x7d3   : > { %v1769_v17 = vld [vmem:[#allocation4] sm:$0xff] }
 0x7d4   : > { %2711 = vrcp.f32 %v1769_v17 }
 0x7d5   : > { %2713 = vrcp.f32 %v1933_v18  ;;  %v2399_v18 = vld [vmem:[%s3741_s19] ss:$0 sm:$0xff] }
 0x7d9   : > { %v1932_v45 = vld [vmem:[#allocation5 + $0x10] sm:$0xff] }
 0x7e1   : > { %v2712_v20 = vpop.eup %2711 }
 0x7e2   : > { %1773 = vperm.xlu0 %2691, %v2712_v20   ;;  %v2714_v21 = vpop.eup %2713 }
 0x7e6   : > { %1937 = vperm.xlu0 %2691, %v2714_v21  }
 0x82c   : > { %v1668_v25 = vpop.xlane.xlu0 %1667 }
 0x82d   : > { %v1669_v28 = vadd.f32 %v1668_v25, %v1665_v23 }
 0x82f   : > { %1670 = vst.msk [vmem:[#allocation4 + $0x18] sm:$0xff] %vm770_vm3, %v1669_v28 }
 0x834   : > { %v1278_v24 = vpop.permute.xlu0 %1277 }
 0x835   : > { %v1280_v26 = vmul.f32 %v1278_v24, %v1274_v29 }
 0x836   : > { %v2016_v30 = vld [vmem:[#allocation4 + $0x18] sm:$0xff] }
 0x837   : > { %v1362_v31 = vadd.f32 %v3534_v11, %v1280_v26  ;;  %2715 = vrcp.f32 %v2016_v30 }
 0x838   : > { %v1086_v32 = vpop.permute.xlu0 %1085 }
 0x839   : > { %1363 = vst.msk [vmem:[#allocation5 + $0x8] sm:$0xff] %vm779_vm2, %v1362_v31  ;;  %v1088_v33 = vmul.f32 %v1086_v32, %v1082_v27 }
 0x83b   : > { %v1162_v34 = vadd.f32 %v3532_v9, %v1088_v33  ;;  %v1767_v9 = vld [vmem:[#allocation18 + $0x18] sm:$0xff] }
 0x83c   : > { %v1676_v35 = vpop.permute.xlu0 %1675 }
 0x83d   : > { %1163 = vst.msk [vmem:[#allocation5] sm:$0xff] %vm779_vm2, %v1162_v34  ;;  %v1678_v44 = vmul.f32 %v1676_v35, %v1672_v42 }
 0x840   : > { %v1777_v36 = vld [vmem:[#allocation5 + $0x8] sm:$0xff]  ;;  %v1783_v37 = vpop.permute.xlu0 %1782 }
 0x841   : > { %v1785_v38 = vmul.f32 %v1783_v37, %v1777_v36 }
 0x843   : > { %2547 = vmatmul.mubr.msk.f32.vlgmr.msra.gmra.mxu0 %vm779_vm2, %v1785_v38 }
 0x844   : > { %v2716_v40 = vpop.eup %2715  ;;  %2555 = vmatpush3.msra.mxu0 %v1766_v39  ;;  %2556 = vmatprep.mubr.msk.f32.mxu0 %vm3048_vm0, %v3047_v0  ;;  %v1768_v11 = vld [vmem:[#allocation5] sm:$0xff] }
 0x845   : > { %2020 = vperm.xlu1 %2692, %v2716_v40  }
 0x85d   : > { %v1774_v41 = vpop.permute.xlu0 %1773 }
 0x85e   : > { %v1776_v43 = vmul.f32 %v1774_v41, %v1768_v11 }
 0x860   : > { %2552 = vmatmul.mubr.msk.f32.vlgmr.msra.gmra.mxu1 %vm779_vm2, %v1776_v43 }
 0x861   : > { %v1938_v46 = vpop.permute.xlu0 %1937  ;;  %2560 = vmatpush3.msra.mxu1 %v1767_v9  ;;  %2561 = vmatprep.mubr.msk.f32.mxu1 %vm3048_vm0, %v3047_v0 }
 0x862   : > { %v1940_v48 = vmul.f32 %v1938_v46, %v1932_v45  ;;  %v1754_v51 = vpop.f32.mrf.mxu0 }
 0x863   : > { %v1758_v55 = vadd.f32 %v1754_v51, %v1678_v44 }
 0x864   : > { %v2543_v58 = vpop.f32.mrf.mxu0  ;;  %2557 = vmatmul.mubr.msk.f32.vlgmr.msra.gmra.mxu0 %vm779_vm2, %v1940_v48 }
 0x865   : > { %1759 = vst.msk [vmem:[#allocation5 + $0x18] sm:$0xff] %vm779_vm2, %v1758_v55 }
 0x86c   : > { %v2015_v56 = vld [vmem:[#allocation5 + $0x18] sm:$0xff] }
 0x8c0   : > { %v2021_v54 = vpop.permute.xlu1 %2020 }
 0x8c1   : > { %v2023_v57 = vmul.f32 %v2021_v54, %v2015_v56 }
 0x8c3   : > { %2562 = vmatmul.mubr.msk.f32.vlgmr.msra.gmra.mxu1 %vm779_vm2, %v2023_v57 }
 0x903   : > { %v1855_v59 = vpop.f32.mrf.mxu0 }
 0x905   : > { %v2548_v60 = vpop.f32.mrf.mxu0 }
 0x920   : > { %v1928_v62 = vpop.f32.mrf.mxu1 }
 0x921   : > { %v1929_v63 = vadd.f32 %v1928_v62, %v1855_v59 }
 0x922   : > { %v2553_v1 = vpop.f32.mrf.mxu1 }
 0x924   : > { %v2010_v47 = vpop.f32.mrf.mxu0 }
 0x925   : > { %v2014_v0 = vadd.f32 %v2010_v47, %v1929_v63 }
 0x926   : > { %v2558_v2 = vpop.f32.mrf.mxu0 }
 0x983   : > { %v2093_v49 = vpop.f32.mrf.mxu1 }
 0x984   : > { %v2097_v61 = vadd.f32 %v2093_v49, %v2014_v0 }
 0x985   : > { %v2563_v3 = vpop.f32.mrf.mxu1 }
 0x986   : > { %v2099_v5 = vadd.f32 %v2097_v61, %v3393_v8 }
 0x988   : > { %v2107_v6 = vadd.f32 %v2397_v4, %v2099_v5 }
 0x98a   : > { %v2108_v7 = vsel %vm695_vm1, %v2107_v6, 0.0 }
 0x98b   : > { %2109 = vadd.xlane.f32.xlu0 %v2108_v7 }
 0xa14   : > { %v2110_v10 = vpop.xlane.xlu0 %2109 }
 0xa15   : > { %v2112_v12 = vmul.f32 0.03125, %v2110_v10 }
 0xa17   : > { %v2113_v13 = vsub.f32 %v2107_v6, %v2112_v12 }
 0xa19   : > { %v2114_v50 = vmul.f32 %v2113_v13, %v2113_v13 }
 0xa1b   : > { %v2115_v52 = vsel %vm695_vm1, %v2114_v50, 0.0 }
 0xa1c   : > { %2116 = vadd.xlane.f32.xlu1 %v2115_v52 }
 0xaa5   : > { %v2117_v53 = vpop.xlane.xlu1 %2116 }
 0xaa6   : > { %v2118_v14 = vmul.f32 0.03125, %v2117_v53 }
 0xaa8   : > { %v2119_v15 = vadd.f32 1e-05, %v2118_v14 }
 0xaaa   : > { %2717 = vrsqrt.f32 %v2119_v15 }
 0xab7   : > { %v2718_v8 = vpop.eup %2717 }
 0xab8   : > { %v2121_v17 = vmul.f32 %v2718_v8, %v2113_v13 }
 0xaba   : > { %v2129_v19 = vmul.f32 %v2398_v16, %v2121_v17 }
 0xabc   : > { %v2137_v20 = vadd.f32 %v2399_v18, %v2129_v19 }
 0xabe   : > { %2138 = vst.msk [vmem:[%s674_s8] sm:$0xff] %vm695_vm1, %v2137_v20 }
 0xabf   : > { %2948 = shalt.err (!%p2945_p1)
}
 0xac0   : > { %s2949_s20 = scalar_lea.hbm %s2151_s13, 128  ;;  %s2953_s1 = scalar_lea.hbm %s3742_s25, 256 }
 0xac1   : > { %p2950_p8 = scmp.ne.s32.totalorder %s2151_s13, %s2949_s20  ;;  %p2954_p9 = scmp.lt.s32.totalorder %s2151_s13, %s3742_s25 }
 0xac2   : > { %p2955_p12 = scmp.lt.s32.totalorder %s2953_s1, %s2949_s20 }
 0xac3   : > { %p2951_p10 = pnand %p2950_p8, %p3227_p7 }
 0xac4   : > { %p2956_p4 = por %p2955_p12, %p2954_p9 }
 0xac5   : > { %p2952_p3 = pneg %p2951_p10 }
 0xac7   : > { %p2957_p11 = pnand %p2956_p4, %p2952_p3 }
 0xac9   : > { %2960 = shalt.err (!%p2957_p11)
}
 0xaca   : > { %2588 = dma.vmem_to_hbm [thread:$0]  (%p3227_p7), %s2154_s15, 128, %s2151_s13, %s2140_s26  }
 0xacb PF: > { %s3743_s12 = sld [smem:[#allocation28_spill]]  ;;  %p3745_p13 = scmp.ge.s32.totalorder %s3035_s18, 2 }
 0xacd   : > { %p2617_p5 = pnand %p3745_p13, %p3175_p6 }
 0xacf   : > { %p2618_p0 = pneg %p2617_p5 }
 0xad1   : > { %s2165_s6 = sand.u32 1, %s3743_s12  }
 0xad2   : > { %s2166_s9 = scalar_lea.sflag [#allocation8], %s2165_s6 }
 0xad3   : > { %3010 = dma.done.wait (%p2618_p0), %s2166_s9, 128  }
 0xad4   : > { %3012 = vsyncadd (%p2618_p0), %s2166_s9, 4294967168  ;;  %s38_s18 = sadd.s32 1, %s3035_s18   ;;  %s3746_s19 = sld [smem:[#allocation29_spill]] }
 0xad5   : > { %p35_p2 = scmp.ge.s32.totalorder %s38_s18, 4   ;;  %s3747_s15 = sld [smem:[#allocation34_spill]] }
 0xad6   : > { %s3748_s24 = sld [smem:[#allocation32_spill]]  ;;  %s3749_s29 = smov %s3019_s30 }
 0xad7   : > { %s3751_s16 = smov %s3031_s17 }
 0xad8   :  { %37 = sbr.rel (!%p35_p2) target bundleno = 24 (0x18), region = 191 }
 0xada   : > { %s3750_s30 = smov %s3746_s19 }
 0xadc   : > { %s3752_s17 = smov %s3748_s24 }
 0xadd   :  { %2171 = vsyncpa [#allocation7], 1 }
 0xade   :  { %2173 = vsyncpa [#allocation7 + $0x1], 1 }
 0xadf   :  { %2174 = vsyncpa [#allocation10], 1 }
 0xae0   :  { %2176 = vsyncpa [#allocation10 + $0x1], 1 }
 0xae1   :  { %2177 = vsyncpa [#allocation13], 1 }
 0xae2   :  { %2179 = vsyncpa [#allocation13 + $0x1], 1 }
 0xae3   :  { %2180 = vsyncpa [#allocation16], 1 }
 0xae4   :  { %2181 = vsyncpa [#allocation19], 1 }
 0xae5   :  { %2182 = vsyncpa [#allocation8], 1 }
 0xae6   :  { %2184 = vsyncpa [#allocation8 + $0x1], 1 }

</bundles_post_ra>
